<compile_context>
chip_gen: v7x
topology: tpu7x:2x2x1
jax: 0.10.0
libtpu: 0.0.40
codegen_flags: <defaults>
</compile_context>

<pallas_src>
import jax
import jax.numpy as jnp
from jax.experimental import pallas as pl
from jax.experimental.pallas import tpu as pltpu


def channel_attention_kernel(patches_ref, w1a_ref, w1b_ref, w2a_ref, w2b_ref,
                             wf_ref, scale_ref, shift_ref, o_ref):
    N = patches_ref.shape[0]
    HW = patches_ref.shape[2]
    C = w1a_ref.shape[0]
    hidden = w1a_ref.shape[1]

    w1a = w1a_ref[...].astype(jnp.float32)      # (C, hidden)
    w1b = w1b_ref[...].astype(jnp.float32)      # (C, hidden)
    w2a = w2a_ref[...].astype(jnp.float32)
    w2b = w2b_ref[...].astype(jnp.float32)
    wf = wf_ref[...].astype(jnp.float32)        # (Cout, 9*C)
    bn_scale = scale_ref[...]                   # (Cout, 1)
    bn_shift = shift_ref[...]                   # (Cout, 1)

    def squeeze_excite(v, wa, wb):
        # v: (C, 1) pooled vector.  hidden is tiny (C // ratio), so the two
        # 1x1-conv "matmuls" are done on the VPU/XLU (multiply + reduction +
        # broadcast FMA) instead of issuing 1-row MXU ops.
        z = jnp.zeros_like(v)
        for j in range(hidden):                               # static unroll
            h = jnp.sum(v * wa[:, j:j + 1], axis=0, keepdims=True)   # (1, 1)
            h = jnp.maximum(h, 0.0)                                   # ReLU
            z = z + h * wb[:, j:j + 1]                                # (C, 1)
        return 1.0 / (1.0 + jnp.exp(-z))                              # sigmoid

    for n in range(N):                           # static unroll, one grid step
        p = patches_ref[n].astype(jnp.float32)   # (9*C, HW) im2col, channel-major

        # Global avg / max pooling: the center patch (dy=1, dx=1) rows of the
        # im2col matrix are exactly the un-padded interior pixels.
        center = p[4 * C:5 * C, :]                               # (C, HW)
        avg = jnp.sum(center, axis=1, keepdims=True) * (1.0 / float(HW))
        mx = jnp.max(center, axis=1, keepdims=True)              # (C, 1)

        att = squeeze_excite(avg, w1a, w1b) + \
              squeeze_excite(mx, w2a, w2b)                       # att1 + att2

        # x1 + x2 = x * (att1 + att2): scale im2col rows (row k*C + c holds
        # channel c); padded zeros stay zero.
        scaled = p.reshape(9, C, HW) * att[None, :, :]           # (9, C, HW)

        # 3x3 conv == ONE MXU matmul: (Cout, 9*C) @ (9*C, HW) -> (Cout, HW)
        res = jnp.dot(wf, scaled.reshape(9 * C, HW),
                      preferred_element_type=jnp.float32)

        # conv bias + BatchNorm (eval mode, folded into scale/shift) + ReLU.
        # TODO(synk): training-mode BatchNorm (batch statistics over N,H,W)
        # not implemented; eval-mode running statistics are folded in.
        out = jnp.maximum(res * bn_scale + bn_shift, 0.0)        # (Cout, HW)

        # Lane-dense NCHW store: rows are HW = 256 lanes wide (no masked vst).
        o_ref[n] = out.astype(o_ref.dtype)


def channel_attention(x_nchw, w1a, w1b, w2a, w2b, wf, scale, shift):
    """x_nchw: (N, C, H, W).  Weights already in kernel layout (see __main__)."""
    N, C, H, W = x_nchw.shape
    Cout = wf.shape[0]

    # Zero-pad spatially and build channel-major im2col: (N, 9*C, H*W) with
    # row index (dy*3+dx)*C + c and column index y*W + x  (matches wf columns).
    xp = jnp.pad(x_nchw, ((0, 0), (0, 0), (1, 1), (1, 1)))
    cols = [xp[:, :, dy:dy + H, dx:dx + W].reshape(N, C, H * W)
            for dy in range(3) for dx in range(3)]
    patches = jnp.concatenate(cols, axis=1)                      # (N, 9C, HW)

    def full(a):
        nd = a.ndim
        return pl.BlockSpec(a.shape, lambda i, _nd=nd: (0,) * _nd)

    out = pl.pallas_call(
        channel_attention_kernel,
        out_shape=jax.ShapeDtypeStruct((N, Cout, H * W), x_nchw.dtype),
        grid=(1,),                                # whole batch in one step
        in_specs=[full(patches), full(w1a), full(w1b), full(w2a), full(w2b),
                  full(wf), full(scale), full(shift)],
        out_specs=pl.BlockSpec((N, Cout, H * W), lambda i: (0, 0, 0)),
        compiler_params=pltpu.CompilerParams(
            dimension_semantics=("arbitrary",)),
    )(patches, w1a, w1b, w2a, w2b, wf, scale, shift)

    return out.reshape(N, Cout, H, W)            # already NCHW; free reshape


def reference(x, w_fc1_a, w_fc1_b, w_fc2_a, w_fc2_b, w_conv, b_conv,
              gamma, beta, mean, var, eps=1e-5):
    """Pure-JAX NCHW reference matching the PyTorch forward (BN eval mode)."""
    avg = jnp.mean(x, axis=(2, 3))
    mx = jnp.max(x, axis=(2, 3))

    def fc(v, wa, wb):
        h = jnp.maximum(v @ wa.T, 0.0)
        return jax.nn.sigmoid(h @ wb.T)

    att = fc(avg, w_fc1_a, w_fc1_b) + fc(mx, w_fc2_a, w_fc2_b)    # (N, C)
    y = x * att[:, :, None, None]
    z = jax.lax.conv_general_dilated(
        y, w_conv, window_strides=(1, 1), padding='SAME',
        dimension_numbers=('NCHW', 'OIHW', 'NCHW'))
    z = z + b_conv[None, :, None, None]
    z = (z - mean[None, :, None, None]) / jnp.sqrt(var[None, :, None, None] + eps)
    z = z * gamma[None, :, None, None] + beta[None, :, None, None]
    return jnp.maximum(z, 0.0)


if __name__ == "__main__":
    # Module hyper-params: embed_dim=8, factor=4, ratio=16
    N, embed_dim, factor, ratio = 2, 8, 4, 16
    C = embed_dim * factor        # 32 input channels
    hidden = C // ratio           # 2
    Cout = embed_dim              # 8 output channels
    H = W = 16
    eps = 1e-5

    key = jax.random.PRNGKey(0)
    ks = jax.random.split(key, 12)
    x = jax.random.normal(ks[0], (N, C, H, W), jnp.float32)

    # Deterministic parameter init (PyTorch layouts)
    w_fc1_a = jax.random.normal(ks[1], (hidden, C), jnp.float32) * 0.2
    w_fc1_b = jax.random.normal(ks[2], (C, hidden), jnp.float32) * 0.2
    w_fc2_a = jax.random.normal(ks[3], (hidden, C), jnp.float32) * 0.2
    w_fc2_b = jax.random.normal(ks[4], (C, hidden), jnp.float32) * 0.2
    w_conv = jax.random.normal(ks[5], (Cout, C, 3, 3), jnp.float32) * 0.1
    b_conv = jax.random.normal(ks[6], (Cout,), jnp.float32) * 0.1
    gamma = 1.0 + 0.1 * jax.random.normal(ks[7], (Cout,), jnp.float32)
    beta = 0.1 * jax.random.normal(ks[8], (Cout,), jnp.float32)
    run_mean = 0.1 * jax.random.normal(ks[9], (Cout,), jnp.float32)
    run_var = jax.random.uniform(ks[10], (Cout,), jnp.float32, 0.5, 1.5)

    # Kernel-layout parameters (channel-major):
    w1a = w_fc1_a.T                                        # (C, hidden)
    w1b = w_fc1_b                                          # (C, hidden)
    w2a = w_fc2_a.T
    w2b = w_fc2_b
    # (Cout, 9*C): column index (dy*3+dx)*C + c  == wf[o, k*C+c] = w_conv[o,c,dy,dx]
    wf = jnp.transpose(w_conv, (0, 2, 3, 1)).reshape(Cout, 9 * C)
    bn_scale = gamma / jnp.sqrt(run_var + eps)
    scale = bn_scale.reshape(Cout, 1)
    shift = ((b_conv - run_mean) * bn_scale + beta).reshape(Cout, 1)

    out = channel_attention(x, w1a, w1b, w2a, w2b, wf, scale, shift)
    out = jax.block_until_ready(out)

    ref = reference(x, w_fc1_a, w_fc1_b, w_fc2_a, w_fc2_b, w_conv, b_conv,
                    gamma, beta, run_mean, run_var, eps)
    assert out.shape == (N, Cout, H, W)
    assert jnp.allclose(out, ref, rtol=1e-3, atol=1e-3), \
        f"max abs err {jnp.max(jnp.abs(out - ref))}"

    print("KERNEL_OK")
</pallas_src>

<mosaic_0001>
module attributes {stable_mosaic.version = 11 : i64} {
  func.func @channel_attention_kernel(%arg0: i32, %arg1: memref<2x288x256xf32, #tpu.memory_space<vmem>>, %arg2: memref<32x2xf32, #tpu.memory_space<vmem>>, %arg3: memref<32x2xf32, #tpu.memory_space<vmem>>, %arg4: memref<32x2xf32, #tpu.memory_space<vmem>>, %arg5: memref<32x2xf32, #tpu.memory_space<vmem>>, %arg6: memref<8x288xf32, #tpu.memory_space<vmem>>, %arg7: memref<8x1xf32, #tpu.memory_space<vmem>>, %arg8: memref<8x1xf32, #tpu.memory_space<vmem>>, %arg9: memref<2x8x256xf32, #tpu.memory_space<vmem>>) attributes {dimension_semantics = [#tpu.dimension_semantics<arbitrary>], iteration_bounds = array<i64: 1>, scalar_prefetch = 0 : i64, scratch_operands = 0 : i64, tpu.core_type = #tpu.core_type<tc>, window_params = [{pipeline_mode = #tpu.pipeline_mode<synchronous>, transform_indices = @transform_0, window_bounds = array<i64: 2, 288, 256>}, {pipeline_mode = #tpu.pipeline_mode<synchronous>, transform_indices = @transform_1, window_bounds = array<i64: 32, 2>}, {pipeline_mode = #tpu.pipeline_mode<synchronous>, transform_indices = @transform_2, window_bounds = array<i64: 32, 2>}, {pipeline_mode = #tpu.pipeline_mode<synchronous>, transform_indices = @transform_3, window_bounds = array<i64: 32, 2>}, {pipeline_mode = #tpu.pipeline_mode<synchronous>, transform_indices = @transform_4, window_bounds = array<i64: 32, 2>}, {pipeline_mode = #tpu.pipeline_mode<synchronous>, transform_indices = @transform_5, window_bounds = array<i64: 8, 288>}, {pipeline_mode = #tpu.pipeline_mode<synchronous>, transform_indices = @transform_6, window_bounds = array<i64: 8, 1>}, {pipeline_mode = #tpu.pipeline_mode<synchronous>, transform_indices = @transform_7, window_bounds = array<i64: 8, 1>}, {pipeline_mode = #tpu.pipeline_mode<synchronous>, transform_indices = @transform_8, window_bounds = array<i64: 2, 8, 256>}]} {
    %c0 = arith.constant 0 : index
    %c0_0 = arith.constant 0 : index
    %0 = vector.load %arg2[%c0, %c0_0] : memref<32x2xf32, #tpu.memory_space<vmem>>, vector<32x2xf32>
    %c0_1 = arith.constant 0 : index
    %c0_2 = arith.constant 0 : index
    %1 = vector.load %arg3[%c0_1, %c0_2] : memref<32x2xf32, #tpu.memory_space<vmem>>, vector<32x2xf32>
    %c0_3 = arith.constant 0 : index
    %c0_4 = arith.constant 0 : index
    %2 = vector.load %arg4[%c0_3, %c0_4] : memref<32x2xf32, #tpu.memory_space<vmem>>, vector<32x2xf32>
    %c0_5 = arith.constant 0 : index
    %c0_6 = arith.constant 0 : index
    %3 = vector.load %arg5[%c0_5, %c0_6] : memref<32x2xf32, #tpu.memory_space<vmem>>, vector<32x2xf32>
    %c0_7 = arith.constant 0 : index
    %c0_8 = arith.constant 0 : index
    %4 = vector.load %arg6[%c0_7, %c0_8] : memref<8x288xf32, #tpu.memory_space<vmem>>, vector<8x288xf32>
    %c0_9 = arith.constant 0 : index
    %c0_10 = arith.constant 0 : index
    %5 = vector.load %arg7[%c0_9, %c0_10] : memref<8x1xf32, #tpu.memory_space<vmem>>, vector<8x1xf32>
    %c0_11 = arith.constant 0 : index
    %c0_12 = arith.constant 0 : index
    %6 = vector.load %arg8[%c0_11, %c0_12] : memref<8x1xf32, #tpu.memory_space<vmem>>, vector<8x1xf32>
    %c0_13 = arith.constant 0 : index
    %c0_14 = arith.constant 0 : index
    %c0_15 = arith.constant 0 : index
    %7 = vector.load %arg1[%c0_13, %c0_14, %c0_15] : memref<2x288x256xf32, #tpu.memory_space<vmem>>, vector<1x288x256xf32>
    %8 = vector.shape_cast %7 : vector<1x288x256xf32> to vector<288x256xf32>
    %9 = vector.extract_strided_slice %8 {offsets = [128, 0], sizes = [32, 256], strides = [1, 1]} : vector<288x256xf32> to vector<32x256xf32>
    %cst = arith.constant dense<0.000000e+00> : vector<32xf32>
    %10 = vector.multi_reduction <add>, %9, %cst [1] : vector<32x256xf32> to vector<32xf32>
    %11 = vector.shape_cast %10 : vector<32xf32> to vector<32x1xf32>
    %cst_16 = arith.constant 3.906250e-03 : f32
    %12 = vector.broadcast %cst_16 : f32 to vector<32x1xf32>
    %13 = arith.mulf %11, %12 : vector<32x1xf32>
    %cst_17 = arith.constant dense<0xFF800000> : vector<32xf32>
    %14 = vector.multi_reduction <maximumf>, %9, %cst_17 [1] : vector<32x256xf32> to vector<32xf32>
    %15 = vector.shape_cast %14 : vector<32xf32> to vector<32x1xf32>
    %cst_18 = arith.constant 0.000000e+00 : f32
    %16 = vector.broadcast %cst_18 : f32 to vector<32x1xf32>
    %17 = vector.extract_strided_slice %0 {offsets = [0, 0], sizes = [32, 1], strides = [1, 1]} : vector<32x2xf32> to vector<32x1xf32>
    %18 = arith.mulf %13, %17 : vector<32x1xf32>
    %cst_19 = arith.constant dense<0.000000e+00> : vector<1xf32>
    %19 = vector.multi_reduction <add>, %18, %cst_19 [0] : vector<32x1xf32> to vector<1xf32>
    %20 = vector.shape_cast %19 : vector<1xf32> to vector<1x1xf32>
    %cst_20 = arith.constant 0.000000e+00 : f32
    %21 = vector.broadcast %cst_20 : f32 to vector<1x1xf32>
    %22 = arith.maximumf %20, %21 : vector<1x1xf32>
    %23 = vector.extract_strided_slice %1 {offsets = [0, 0], sizes = [32, 1], strides = [1, 1]} : vector<32x2xf32> to vector<32x1xf32>
    %24 = vector.broadcast %22 : vector<1x1xf32> to vector<32x1xf32>
    %25 = arith.mulf %24, %23 : vector<32x1xf32>
    %26 = arith.addf %16, %25 : vector<32x1xf32>
    %27 = vector.extract_strided_slice %0 {offsets = [0, 1], sizes = [32, 1], strides = [1, 1]} : vector<32x2xf32> to vector<32x1xf32>
    %28 = arith.mulf %13, %27 : vector<32x1xf32>
    %cst_21 = arith.constant dense<0.000000e+00> : vector<1xf32>
    %29 = vector.multi_reduction <add>, %28, %cst_21 [0] : vector<32x1xf32> to vector<1xf32>
    %30 = vector.shape_cast %29 : vector<1xf32> to vector<1x1xf32>
    %cst_22 = arith.constant 0.000000e+00 : f32
    %31 = vector.broadcast %cst_22 : f32 to vector<1x1xf32>
    %32 = arith.maximumf %30, %31 : vector<1x1xf32>
    %33 = vector.extract_strided_slice %1 {offsets = [0, 1], sizes = [32, 1], strides = [1, 1]} : vector<32x2xf32> to vector<32x1xf32>
    %34 = vector.broadcast %32 : vector<1x1xf32> to vector<32x1xf32>
    %35 = arith.mulf %34, %33 : vector<32x1xf32>
    %36 = arith.addf %26, %35 : vector<32x1xf32>
    %cst_23 = arith.constant 0.000000e+00 : f32
    %37 = vector.broadcast %cst_23 : f32 to vector<32x1xf32>
    %38 = arith.subf %37, %36 : vector<32x1xf32>
    %39 = math.exp %38 : vector<32x1xf32>
    %cst_24 = arith.constant 1.000000e+00 : f32
    %40 = vector.broadcast %cst_24 : f32 to vector<32x1xf32>
    %41 = arith.addf %40, %39 : vector<32x1xf32>
    %cst_25 = arith.constant 1.000000e+00 : f32
    %42 = vector.broadcast %cst_25 : f32 to vector<32x1xf32>
    %43 = arith.divf %42, %41 : vector<32x1xf32>
    %cst_26 = arith.constant 0.000000e+00 : f32
    %44 = vector.broadcast %cst_26 : f32 to vector<32x1xf32>
    %45 = vector.extract_strided_slice %2 {offsets = [0, 0], sizes = [32, 1], strides = [1, 1]} : vector<32x2xf32> to vector<32x1xf32>
    %46 = arith.mulf %15, %45 : vector<32x1xf32>
    %cst_27 = arith.constant dense<0.000000e+00> : vector<1xf32>
    %47 = vector.multi_reduction <add>, %46, %cst_27 [0] : vector<32x1xf32> to vector<1xf32>
    %48 = vector.shape_cast %47 : vector<1xf32> to vector<1x1xf32>
    %cst_28 = arith.constant 0.000000e+00 : f32
    %49 = vector.broadcast %cst_28 : f32 to vector<1x1xf32>
    %50 = arith.maximumf %48, %49 : vector<1x1xf32>
    %51 = vector.extract_strided_slice %3 {offsets = [0, 0], sizes = [32, 1], strides = [1, 1]} : vector<32x2xf32> to vector<32x1xf32>
    %52 = vector.broadcast %50 : vector<1x1xf32> to vector<32x1xf32>
    %53 = arith.mulf %52, %51 : vector<32x1xf32>
    %54 = arith.addf %44, %53 : vector<32x1xf32>
    %55 = vector.extract_strided_slice %2 {offsets = [0, 1], sizes = [32, 1], strides = [1, 1]} : vector<32x2xf32> to vector<32x1xf32>
    %56 = arith.mulf %15, %55 : vector<32x1xf32>
    %cst_29 = arith.constant dense<0.000000e+00> : vector<1xf32>
    %57 = vector.multi_reduction <add>, %56, %cst_29 [0] : vector<32x1xf32> to vector<1xf32>
    %58 = vector.shape_cast %57 : vector<1xf32> to vector<1x1xf32>
    %cst_30 = arith.constant 0.000000e+00 : f32
    %59 = vector.broadcast %cst_30 : f32 to vector<1x1xf32>
    %60 = arith.maximumf %58, %59 : vector<1x1xf32>
    %61 = vector.extract_strided_slice %3 {offsets = [0, 1], sizes = [32, 1], strides = [1, 1]} : vector<32x2xf32> to vector<32x1xf32>
    %62 = vector.broadcast %60 : vector<1x1xf32> to vector<32x1xf32>
    %63 = arith.mulf %62, %61 : vector<32x1xf32>
    %64 = arith.addf %54, %63 : vector<32x1xf32>
    %cst_31 = arith.constant 0.000000e+00 : f32
    %65 = vector.broadcast %cst_31 : f32 to vector<32x1xf32>
    %66 = arith.subf %65, %64 : vector<32x1xf32>
    %67 = math.exp %66 : vector<32x1xf32>
    %cst_32 = arith.constant 1.000000e+00 : f32
    %68 = vector.broadcast %cst_32 : f32 to vector<32x1xf32>
    %69 = arith.addf %68, %67 : vector<32x1xf32>
    %cst_33 = arith.constant 1.000000e+00 : f32
    %70 = vector.broadcast %cst_33 : f32 to vector<32x1xf32>
    %71 = arith.divf %70, %69 : vector<32x1xf32>
    %72 = arith.addf %43, %71 : vector<32x1xf32>
    %73 = vector.shape_cast %8 : vector<288x256xf32> to vector<9x32x256xf32>
    %74 = vector.shape_cast %72 : vector<32x1xf32> to vector<1x32x1xf32>
    %75 = vector.broadcast %74 : vector<1x32x1xf32> to vector<9x32x256xf32>
    %76 = arith.mulf %73, %75 : vector<9x32x256xf32>
    %77 = vector.shape_cast %76 : vector<9x32x256xf32> to vector<288x256xf32>
    %cst_34 = arith.constant dense<0.000000e+00> : vector<8x256xf32>
    %78 = tpu.matmul %4, %77, %cst_34 {dimension_numbers = #tpu.dot_dimension_numbers<[1], [0], [0], [1], [0, 0, 1, 1], [], []>} : vector<8x288xf32>, vector<288x256xf32>, vector<8x256xf32> -> vector<8x256xf32>
    %79 = vector.broadcast %5 : vector<8x1xf32> to vector<8x256xf32>
    %80 = arith.mulf %78, %79 : vector<8x256xf32>
    %81 = vector.broadcast %6 : vector<8x1xf32> to vector<8x256xf32>
    %82 = arith.addf %80, %81 : vector<8x256xf32>
    %cst_35 = arith.constant 0.000000e+00 : f32
    %83 = vector.broadcast %cst_35 : f32 to vector<8x256xf32>
    %84 = arith.maximumf %82, %83 : vector<8x256xf32>
    %c0_36 = arith.constant 0 : index
    %c0_37 = arith.constant 0 : index
    %c0_38 = arith.constant 0 : index
    %85 = vector.load %arg9[%c0_36, %c0_37, %c0_38] : memref<2x8x256xf32, #tpu.memory_space<vmem>>, vector<1x8x256xf32>
    %86 = vector.shape_cast %85 : vector<1x8x256xf32> to vector<8x256xf32>
    %87 = vector.shape_cast %84 : vector<8x256xf32> to vector<1x8x256xf32>
    tpu.vector_store %arg9[%c0_36, %c0_37, %c0_38], %87 {strides = array<i32>} : memref<2x8x256xf32, #tpu.memory_space<vmem>>, vector<1x8x256xf32>,
    %c1 = arith.constant 1 : index
    %c0_39 = arith.constant 0 : index
    %c0_40 = arith.constant 0 : index
    %88 = vector.load %arg1[%c1, %c0_39, %c0_40] : memref<2x288x256xf32, #tpu.memory_space<vmem>>, vector<1x288x256xf32>
    %89 = vector.shape_cast %88 : vector<1x288x256xf32> to vector<288x256xf32>
    %90 = vector.extract_strided_slice %89 {offsets = [128, 0], sizes = [32, 256], strides = [1, 1]} : vector<288x256xf32> to vector<32x256xf32>
    %cst_41 = arith.constant dense<0.000000e+00> : vector<32xf32>
    %91 = vector.multi_reduction <add>, %90, %cst_41 [1] : vector<32x256xf32> to vector<32xf32>
    %92 = vector.shape_cast %91 : vector<32xf32> to vector<32x1xf32>
    %cst_42 = arith.constant 3.906250e-03 : f32
    %93 = vector.broadcast %cst_42 : f32 to vector<32x1xf32>
    %94 = arith.mulf %92, %93 : vector<32x1xf32>
    %cst_43 = arith.constant dense<0xFF800000> : vector<32xf32>
    %95 = vector.multi_reduction <maximumf>, %90, %cst_43 [1] : vector<32x256xf32> to vector<32xf32>
    %96 = vector.shape_cast %95 : vector<32xf32> to vector<32x1xf32>
    %cst_44 = arith.constant 0.000000e+00 : f32
    %97 = vector.broadcast %cst_44 : f32 to vector<32x1xf32>
    %98 = vector.extract_strided_slice %0 {offsets = [0, 0], sizes = [32, 1], strides = [1, 1]} : vector<32x2xf32> to vector<32x1xf32>
    %99 = arith.mulf %94, %98 : vector<32x1xf32>
    %cst_45 = arith.constant dense<0.000000e+00> : vector<1xf32>
    %100 = vector.multi_reduction <add>, %99, %cst_45 [0] : vector<32x1xf32> to vector<1xf32>
    %101 = vector.shape_cast %100 : vector<1xf32> to vector<1x1xf32>
    %cst_46 = arith.constant 0.000000e+00 : f32
    %102 = vector.broadcast %cst_46 : f32 to vector<1x1xf32>
    %103 = arith.maximumf %101, %102 : vector<1x1xf32>
    %104 = vector.extract_strided_slice %1 {offsets = [0, 0], sizes = [32, 1], strides = [1, 1]} : vector<32x2xf32> to vector<32x1xf32>
    %105 = vector.broadcast %103 : vector<1x1xf32> to vector<32x1xf32>
    %106 = arith.mulf %105, %104 : vector<32x1xf32>
    %107 = arith.addf %97, %106 : vector<32x1xf32>
    %108 = vector.extract_strided_slice %0 {offsets = [0, 1], sizes = [32, 1], strides = [1, 1]} : vector<32x2xf32> to vector<32x1xf32>
    %109 = arith.mulf %94, %108 : vector<32x1xf32>
    %cst_47 = arith.constant dense<0.000000e+00> : vector<1xf32>
    %110 = vector.multi_reduction <add>, %109, %cst_47 [0] : vector<32x1xf32> to vector<1xf32>
    %111 = vector.shape_cast %110 : vector<1xf32> to vector<1x1xf32>
    %cst_48 = arith.constant 0.000000e+00 : f32
    %112 = vector.broadcast %cst_48 : f32 to vector<1x1xf32>
    %113 = arith.maximumf %111, %112 : vector<1x1xf32>
    %114 = vector.extract_strided_slice %1 {offsets = [0, 1], sizes = [32, 1], strides = [1, 1]} : vector<32x2xf32> to vector<32x1xf32>
    %115 = vector.broadcast %113 : vector<1x1xf32> to vector<32x1xf32>
    %116 = arith.mulf %115, %114 : vector<32x1xf32>
    %117 = arith.addf %107, %116 : vector<32x1xf32>
    %cst_49 = arith.constant 0.000000e+00 : f32
    %118 = vector.broadcast %cst_49 : f32 to vector<32x1xf32>
    %119 = arith.subf %118, %117 : vector<32x1xf32>
    %120 = math.exp %119 : vector<32x1xf32>
    %cst_50 = arith.constant 1.000000e+00 : f32
    %121 = vector.broadcast %cst_50 : f32 to vector<32x1xf32>
    %122 = arith.addf %121, %120 : vector<32x1xf32>
    %cst_51 = arith.constant 1.000000e+00 : f32
    %123 = vector.broadcast %cst_51 : f32 to vector<32x1xf32>
    %124 = arith.divf %123, %122 : vector<32x1xf32>
    %cst_52 = arith.constant 0.000000e+00 : f32
    %125 = vector.broadcast %cst_52 : f32 to vector<32x1xf32>
    %126 = vector.extract_strided_slice %2 {offsets = [0, 0], sizes = [32, 1], strides = [1, 1]} : vector<32x2xf32> to vector<32x1xf32>
    %127 = arith.mulf %96, %126 : vector<32x1xf32>
    %cst_53 = arith.constant dense<0.000000e+00> : vector<1xf32>
    %128 = vector.multi_reduction <add>, %127, %cst_53 [0] : vector<32x1xf32> to vector<1xf32>
    %129 = vector.shape_cast %128 : vector<1xf32> to vector<1x1xf32>
    %cst_54 = arith.constant 0.000000e+00 : f32
    %130 = vector.broadcast %cst_54 : f32 to vector<1x1xf32>
    %131 = arith.maximumf %129, %130 : vector<1x1xf32>
    %132 = vector.extract_strided_slice %3 {offsets = [0, 0], sizes = [32, 1], strides = [1, 1]} : vector<32x2xf32> to vector<32x1xf32>
    %133 = vector.broadcast %131 : vector<1x1xf32> to vector<32x1xf32>
    %134 = arith.mulf %133, %132 : vector<32x1xf32>
    %135 = arith.addf %125, %134 : vector<32x1xf32>
    %136 = vector.extract_strided_slice %2 {offsets = [0, 1], sizes = [32, 1], strides = [1, 1]} : vector<32x2xf32> to vector<32x1xf32>
    %137 = arith.mulf %96, %136 : vector<32x1xf32>
    %cst_55 = arith.constant dense<0.000000e+00> : vector<1xf32>
    %138 = vector.multi_reduction <add>, %137, %cst_55 [0] : vector<32x1xf32> to vector<1xf32>
    %139 = vector.shape_cast %138 : vector<1xf32> to vector<1x1xf32>
    %cst_56 = arith.constant 0.000000e+00 : f32
    %140 = vector.broadcast %cst_56 : f32 to vector<1x1xf32>
    %141 = arith.maximumf %139, %140 : vector<1x1xf32>
    %142 = vector.extract_strided_slice %3 {offsets = [0, 1], sizes = [32, 1], strides = [1, 1]} : vector<32x2xf32> to vector<32x1xf32>
    %143 = vector.broadcast %141 : vector<1x1xf32> to vector<32x1xf32>
    %144 = arith.mulf %143, %142 : vector<32x1xf32>
    %145 = arith.addf %135, %144 : vector<32x1xf32>
    %cst_57 = arith.constant 0.000000e+00 : f32
    %146 = vector.broadcast %cst_57 : f32 to vector<32x1xf32>
    %147 = arith.subf %146, %145 : vector<32x1xf32>
    %148 = math.exp %147 : vector<32x1xf32>
    %cst_58 = arith.constant 1.000000e+00 : f32
    %149 = vector.broadcast %cst_58 : f32 to vector<32x1xf32>
    %150 = arith.addf %149, %148 : vector<32x1xf32>
    %cst_59 = arith.constant 1.000000e+00 : f32
    %151 = vector.broadcast %cst_59 : f32 to vector<32x1xf32>
    %152 = arith.divf %151, %150 : vector<32x1xf32>
    %153 = arith.addf %124, %152 : vector<32x1xf32>
    %154 = vector.shape_cast %89 : vector<288x256xf32> to vector<9x32x256xf32>
    %155 = vector.shape_cast %153 : vector<32x1xf32> to vector<1x32x1xf32>
    %156 = vector.broadcast %155 : vector<1x32x1xf32> to vector<9x32x256xf32>
    %157 = arith.mulf %154, %156 : vector<9x32x256xf32>
    %158 = vector.shape_cast %157 : vector<9x32x256xf32> to vector<288x256xf32>
    %cst_60 = arith.constant dense<0.000000e+00> : vector<8x256xf32>
    %159 = tpu.matmul %4, %158, %cst_60 {dimension_numbers = #tpu.dot_dimension_numbers<[1], [0], [0], [1], [0, 0, 1, 1], [], []>} : vector<8x288xf32>, vector<288x256xf32>, vector<8x256xf32> -> vector<8x256xf32>
    %160 = vector.broadcast %5 : vector<8x1xf32> to vector<8x256xf32>
    %161 = arith.mulf %159, %160 : vector<8x256xf32>
    %162 = vector.broadcast %6 : vector<8x1xf32> to vector<8x256xf32>
    %163 = arith.addf %161, %162 : vector<8x256xf32>
    %cst_61 = arith.constant 0.000000e+00 : f32
    %164 = vector.broadcast %cst_61 : f32 to vector<8x256xf32>
    %165 = arith.maximumf %163, %164 : vector<8x256xf32>
    %c1_62 = arith.constant 1 : index
    %c0_63 = arith.constant 0 : index
    %c0_64 = arith.constant 0 : index
    %166 = vector.load %arg9[%c1_62, %c0_63, %c0_64] : memref<2x8x256xf32, #tpu.memory_space<vmem>>, vector<1x8x256xf32>
    %167 = vector.shape_cast %166 : vector<1x8x256xf32> to vector<8x256xf32>
    %168 = vector.shape_cast %165 : vector<8x256xf32> to vector<1x8x256xf32>
    tpu.vector_store %arg9[%c1_62, %c0_63, %c0_64], %168 {strides = array<i32>} : memref<2x8x256xf32, #tpu.memory_space<vmem>>, vector<1x8x256xf32>,
    return
  }
  func.func @transform_0(%arg0: i32) -> (i32, i32, i32) {
    %c0_i32 = arith.constant 0 : i32
    %c0_i32_0 = arith.constant 0 : i32
    %c0_i32_1 = arith.constant 0 : i32
    %c0_i32_2 = arith.constant 0 : i32
    return %c0_i32, %c0_i32_0, %c0_i32_1 : i32, i32, i32
  }
  func.func @transform_1(%arg0: i32) -> (i32, i32) {
    %c0_i32 = arith.constant 0 : i32
    %c0_i32_0 = arith.constant 0 : i32
    %c0_i32_1 = arith.constant 0 : i32
    return %c0_i32, %c0_i32_0 : i32, i32
  }
  func.func @transform_2(%arg0: i32) -> (i32, i32) {
    %c0_i32 = arith.constant 0 : i32
    %c0_i32_0 = arith.constant 0 : i32
    %c0_i32_1 = arith.constant 0 : i32
    return %c0_i32, %c0_i32_0 : i32, i32
  }
  func.func @transform_3(%arg0: i32) -> (i32, i32) {
    %c0_i32 = arith.constant 0 : i32
    %c0_i32_0 = arith.constant 0 : i32
    %c0_i32_1 = arith.constant 0 : i32
    return %c0_i32, %c0_i32_0 : i32, i32
  }
  func.func @transform_4(%arg0: i32) -> (i32, i32) {
    %c0_i32 = arith.constant 0 : i32
    %c0_i32_0 = arith.constant 0 : i32
    %c0_i32_1 = arith.constant 0 : i32
    return %c0_i32, %c0_i32_0 : i32, i32
  }
  func.func @transform_5(%arg0: i32) -> (i32, i32) {
    %c0_i32 = arith.constant 0 : i32
    %c0_i32_0 = arith.constant 0 : i32
    %c0_i32_1 = arith.constant 0 : i32
    return %c0_i32, %c0_i32_0 : i32, i32
  }
  func.func @transform_6(%arg0: i32) -> (i32, i32) {
    %c0_i32 = arith.constant 0 : i32
    %c0_i32_0 = arith.constant 0 : i32
    %c0_i32_1 = arith.constant 0 : i32
    return %c0_i32, %c0_i32_0 : i32, i32
  }
  func.func @transform_7(%arg0: i32) -> (i32, i32) {
    %c0_i32 = arith.constant 0 : i32
    %c0_i32_0 = arith.constant 0 : i32
    %c0_i32_1 = arith.constant 0 : i32
    return %c0_i32, %c0_i32_0 : i32, i32
  }
  func.func @transform_8(%arg0: i32) -> (i32, i32, i32) {
    %c0_i32 = arith.constant 0 : i32
    %c0_i32_0 = arith.constant 0 : i32
    %c0_i32_1 = arith.constant 0 : i32
    %c0_i32_2 = arith.constant 0 : i32
    return %c0_i32, %c0_i32_0, %c0_i32_1 : i32, i32, i32
  }
}

</mosaic_0001>

<bundles_post_ra>
// kernel: tpu_custom_call.1
= control target key start
LH: loop header
LB: loop body
LE: loop exit
PB: predicated region body
PF: predicated region fallthrough
CT: control target
= control target key end

     0   :  { %13 = vsyncpa [#allocation3], 0  ;;  %s1931_s0 = inlined_call_operand.hbm [shape: f32[2,288,256], index: 0, kind: input, shape index: {}]   ;;  %s1932_s1 = inlined_call_operand.vmem [shape: f32[32,2], index: 1, kind: input, shape index: {}]   ;;  %s1933_s2 = inlined_call_operand.vmem [shape: f32[32,2], index: 2, kind: input, shape index: {}]   ;;  %s1934_s3 = inlined_call_operand.vmem [shape: f32[32,2], index: 3, kind: input, shape index: {}]   ;;  %s1935_s4 = inlined_call_operand.vmem [shape: f32[32,2], index: 4, kind: input, shape index: {}]   ;;  %s1936_s5 = inlined_call_operand.vmem [shape: f32[8,288], index: 5, kind: input, shape index: {}]   ;;  %s1937_s6 = inlined_call_operand.vmem [shape: f32[8,1], index: 6, kind: input, shape index: {}]   ;;  %s1938_s7 = inlined_call_operand.vmem [shape: f32[8,1], index: 7, kind: input, shape index: {}]   ;;  %s1939_s8 = inlined_call_operand.hbm [shape: f32[2,8,256], index: 8, kind: output, shape index: {}]  }
   0x1   :  { %14 = vsyncpa [#allocation4], 0  ;;  %s1431_s27 = smov [#allocation2]   ;;  %s1383_s9 = scalar_lea.hbm %s1931_s0, 18432 }
   0x2   :  { %s20_s28 = sshll.u32 %s1431_s27, 4  ;;  %p1384_p0 = scmp.ne.s32.totalorder %s1931_s0, %s1383_s9  ;;  %s21_s28 = int_to_ptr.vmem [resolvable:$true] %s20_s28 }
   0x3   :  { %p1387_p1 = scmp.lt.u32.totalorder %s1383_s9, %s1931_s0 }
   0x5   :  { %p1389_p2 = pnand %p1387_p1, %p1384_p0 }
   0x7   :  { %1392 = shalt.err (!%p1389_p2)
}
   0x8   :  { %s1393_s14 = scalar_lea.vmem %s21_s28, 18432  ;;  %p1398_p4 = scmp.lt.s32.totalorder %s21_s28, %s21_s28 }
   0x9   :  { %p1394_p3 = scmp.ne.s32.totalorder %s21_s28, %s1393_s14  ;;  %p1399_p5 = scmp.lt.s32.totalorder %s1393_s14, %s1393_s14 }
   0xb   :  { %p1400_p6 = por %p1399_p5, %p1398_p4 }
   0xd   :  { %p1401_p7 = pnand %p1400_p6, %p1394_p3 }
   0xf   :  { %1404 = shalt.err (!%p1401_p7)
}
  0x10   :  { %s1432_s15 = smov 256   ;;  %s1433_s16 = smov 16  }
  0x11   :  { %26 = dma.hbm_to_vmem [thread:$0]  %s1931_s0, 18432, %s21_s28, [#allocation3], %s1432_s15, %s1432_s15, %s1433_s16  }
  0x12   :  { %1427 = dma.done.wait [#allocation3], 18432  }
  0x13   :  { %1428 = vsyncadd [#allocation3], 4294948864  ;;  %v636_v0 = vld [vmem:[#allocation2 + $0x340] sm:$0xff]  ;;  %v637_v1 = vld [vmem:[#allocation2 + $0x348] sm:$0xff]  ;;  %vm169_vm0 = vcmask 7168   ;;  %vm192_vm1 = vcmask 15368  }
  0x14   :  { %v97_v2 = vld [vmem:[#allocation2 + $0x100] sm:$0xff]  ;;  %v676_v3 = vadd.f32 %v637_v1, %v636_v0  ;;  %v98_v4 = vld [vmem:[#allocation2 + $0x108] sm:$0xff]  ;;  %v638_v5 = vld [vmem:[#allocation2 + $0x350] sm:$0xff]  ;;  %v692_v21 = vmax.f32 %v636_v0, %v637_v1  ;;  %s1434_s26 = smov 127   ;;  %vm439_vm2 = vcmask 261120  }
  0x15   :  { %v639_v6 = vld [vmem:[#allocation2 + $0x358] sm:$0xff]  ;;  %v137_v7 = vadd.f32 %v98_v4, %v97_v2  ;;  %v99_v8 = vld [vmem:[#allocation2 + $0x110] sm:$0xff]  ;;  %v101_v12 = vld [vmem:[#allocation2 + $0x120] sm:$0xff]  ;;  %v153_v14 = vmax.f32 %v97_v2, %v98_v4 }
  0x16   :  { %v100_v9 = vld [vmem:[#allocation2 + $0x118] sm:$0xff]  ;;  %677 = vadd.xlane.f32.xlu1 %v676_v3  ;;  %v679_v10 = vadd.f32 %v639_v6, %v638_v5  ;;  %v102_v13 = vld [vmem:[#allocation2 + $0x128] sm:$0xff]  ;;  %v640_v16 = vld [vmem:[#allocation2 + $0x360] sm:$0xff]  ;;  %v695_v20 = vmax.f32 %v638_v5, %v639_v6 }
  0x17   :  { %138 = vadd.xlane.f32.xlu0 %v137_v7  ;;  %v140_v11 = vadd.f32 %v100_v9, %v99_v8  ;;  %v143_v15 = vadd.f32 %v102_v13, %v101_v12  ;;  %v641_v17 = vld [vmem:[#allocation2 + $0x368] sm:$0xff]  ;;  %v156_v19 = vmax.f32 %v99_v8, %v100_v9  ;;  %v103_v22 = vld [vmem:[#allocation2 + $0x130] sm:$0xff]  ;;  %v104_v23 = vld [vmem:[#allocation2 + $0x138] sm:$0xff]  ;;  %v159_v24 = vmax.f32 %v101_v12, %v102_v13 }
  0x18   :  { %v682_v18 = vadd.f32 %v641_v17, %v640_v16  ;;  %v146_v25 = vadd.f32 %v104_v23, %v103_v22  ;;  %v642_v26 = vld [vmem:[#allocation2 + $0x370] sm:$0xff]  ;;  %v643_v27 = vld [vmem:[#allocation2 + $0x378] sm:$0xff]  ;;  %v698_v28 = vmax.f32 %v640_v16, %v641_v17  ;;  %v162_v31 = vmax.f32 %v103_v22, %v104_v23  ;;  %v44_v35 = vld [vmem:[%s1932_s1] sm:$0xff] }
  0x19   :  { %v685_v29 = vadd.f32 %v643_v27, %v642_v26  ;;  %v701_v30 = vmax.f32 %v642_v26, %v643_v27  ;;  %v45_v39 = vld [vmem:[%s1932_s1 + $0x8] sm:$0xff]  ;;  %v52_v48 = vld [vmem:[%s1934_s3] sm:$0xff]  ;;  %v46_v56 = vld [vmem:[%s1932_s1 + $0x10] sm:$0xff] }
  0x1a   :  { %680 = vadd.xlane.f32.xlu1 %v679_v10  ;;  %v53_v57 = vld [vmem:[%s1934_s3 + $0x8] sm:$0xff] }
  0x1b   :  { %141 = vadd.xlane.f32.xlu0 %v140_v11 }
  0x1e   :  { %154 = vmax.xlane.f32.xlu1 %v153_v14  ;;  %v54_v14 = vld [vmem:[%s1934_s3 + $0x10] sm:$0xff] }
  0x1f   :  { %144 = vadd.xlane.f32.xlu0 %v143_v15 }
  0x22   :  { %683 = vadd.xlane.f32.xlu1 %v682_v18 }
  0x23   :  { %157 = vmax.xlane.f32.xlu0 %v156_v19 }
  0x26   :  { %696 = vmax.xlane.f32.xlu1 %v695_v20 }
  0x27   :  { %693 = vmax.xlane.f32.xlu0 %v692_v21 }
  0x2a   :  { %160 = vmax.xlane.f32.xlu1 %v159_v24 }
  0x2b   :  { %147 = vadd.xlane.f32.xlu0 %v146_v25  ;;  %v47_v25 = vld [vmem:[%s1932_s1 + $0x18] sm:$0xff] }
  0x2e   :  { %699 = vmax.xlane.f32.xlu1 %v698_v28 }
  0x2f   :  { %686 = vadd.xlane.f32.xlu0 %v685_v29 }
  0x32   :  { %702 = vmax.xlane.f32.xlu1 %v701_v30 }
  0x33   :  { %163 = vmax.xlane.f32.xlu0 %v162_v31 }
  0xa3   :  { %v678_v32 = vpop.xlane.xlu1 %677 }
  0xa4   :  { %v688_v33 = vmul.f32 0.00390625, %v678_v32  ;;  %v139_v34 = vpop.xlane.xlu0 %138 }
  0xa5   :  { %v149_v36 = vmul.f32 0.00390625, %v139_v34 }
  0xa6   :  { %v704_v37 = vmul.f32 %v688_v33, %v44_v35 }
  0xa7   :  { %v681_v38 = vpop.xlane.xlu1 %680  ;;  %v165_v42 = vmul.f32 %v149_v36, %v44_v35 }
  0xa8   :  { %v689_v40 = vmul.f32 0.00390625, %v681_v38  ;;  %v142_v41 = vpop.xlane.xlu0 %141  ;;  %v708_v44 = vsel %vm169_vm0, %v704_v37, 0.0  ;;  %v730_v15 = vsel %vm192_vm1, %v704_v37, 0.0 }
  0xa9   :  { %v150_v43 = vmul.f32 0.00390625, %v142_v41  ;;  %v170_v51 = vsel %vm169_vm0, %v165_v42, 0.0  ;;  %v193_v11 = vsel %vm192_vm1, %v165_v42, 0.0 }
  0xaa   :  { %v705_v45 = vmul.f32 %v689_v40, %v45_v39 }
  0xab   :  { %v166_v46 = vmul.f32 %v150_v43, %v45_v39  ;;  %v155_v47 = vpop.xlane.xlu1 %154 }
  0xac   :  { %v709_v49 = vsel %vm169_vm0, %v705_v45, 0.0  ;;  %v145_v50 = vpop.xlane.xlu0 %144  ;;  %v255_v55 = vmul.f32 %v155_v47, %v52_v48  ;;  %v731_v16 = vsel %vm192_vm1, %v705_v45, 0.0  ;;  %v55_v45 = vld [vmem:[%s1934_s3 + $0x18] sm:$0xff] }
  0xad   :  { %v710_v52 = vadd.f32 %v709_v49, %v708_v44  ;;  %v171_v53 = vsel %vm169_vm0, %v166_v46, 0.0  ;;  %v151_v58 = vmul.f32 0.00390625, %v145_v50  ;;  %v194_v5 = vsel %vm192_vm1, %v166_v46, 0.0 }
  0xae   :  { %v172_v54 = vadd.f32 %v171_v53, %v170_v51  ;;  %v259_v0 = vsel %vm169_vm0, %v255_v55, 0.0  ;;  %v195_v17 = vadd.f32 %v194_v5, %v193_v11  ;;  %v281_v20 = vsel %vm192_vm1, %v255_v55, 0.0 }
  0xaf   :  { %v684_v59 = vpop.xlane.xlu1 %683  ;;  %v167_v62 = vmul.f32 %v151_v58, %v46_v56  ;;  %v732_v29 = vadd.f32 %v731_v16, %v730_v15 }
  0xb0   :  { %v690_v60 = vmul.f32 0.00390625, %v684_v59  ;;  %v158_v61 = vpop.xlane.xlu0 %157 }
  0xb1   :  { %v256_v63 = vmul.f32 %v158_v61, %v53_v57  ;;  %v173_v2 = vsel %vm169_vm0, %v167_v62, 0.0  ;;  %v196_v18 = vsel %vm192_vm1, %v167_v62, 0.0 }
  0xb2   :  { %v706_v1 = vmul.f32 %v690_v60, %v46_v56  ;;  %v174_v6 = vadd.f32 %v173_v2, %v172_v54  ;;  %v197_v30 = vadd.f32 %v196_v18, %v195_v17 }
  0xb3   :  { %v260_v3 = vsel %vm169_vm0, %v256_v63, 0.0  ;;  %v697_v4 = vpop.xlane.xlu1 %696  ;;  %v282_v21 = vsel %vm192_vm1, %v256_v63, 0.0 }
  0xb4   :  { %v711_v7 = vsel %vm169_vm0, %v706_v1, 0.0  ;;  %v694_v8 = vpop.xlane.xlu0 %693  ;;  %v261_v10 = vadd.f32 %v260_v3, %v259_v0  ;;  %v793_v12 = vmul.f32 %v697_v4, %v53_v57  ;;  %v733_v31 = vsel %vm192_vm1, %v706_v1, 0.0 }
  0xb5   :  { %v712_v9 = vadd.f32 %v711_v7, %v710_v52  ;;  %v792_v13 = vmul.f32 %v694_v8, %v52_v48  ;;  %v283_v32 = vadd.f32 %v282_v21, %v281_v20  ;;  %v734_v50 = vadd.f32 %v733_v31, %v732_v29 }
  0xb6   :  { %v797_v22 = vsel %vm169_vm0, %v793_v12, 0.0  ;;  %v819_v36 = vsel %vm192_vm1, %v793_v12, 0.0 }
  0xb7   :  { %v161_v19 = vpop.xlane.xlu1 %160  ;;  %v796_v23 = vsel %vm169_vm0, %v792_v13, 0.0  ;;  %v818_v37 = vsel %vm192_vm1, %v792_v13, 0.0 }
  0xb8   :  { %v148_v24 = vpop.xlane.xlu0 %147  ;;  %v798_v26 = vadd.f32 %v797_v22, %v796_v23  ;;  %v257_v27 = vmul.f32 %v161_v19, %v54_v14  ;;  %v820_v51 = vadd.f32 %v819_v36, %v818_v37 }
  0xb9   :  { %v152_v28 = vmul.f32 0.00390625, %v148_v24 }
  0xba   :  { %v262_v33 = vsel %vm169_vm0, %v257_v27, 0.0  ;;  %v284_v41 = vsel %vm192_vm1, %v257_v27, 0.0 }
  0xbb   :  { %v168_v34 = vmul.f32 %v152_v28, %v47_v25  ;;  %v700_v35 = vpop.xlane.xlu1 %699  ;;  %v263_v38 = vadd.f32 %v262_v33, %v261_v10  ;;  %v285_v55 = vadd.f32 %v284_v41, %v283_v32 }
  0xbc   :  { %v794_v39 = vmul.f32 %v700_v35, %v54_v14  ;;  %v687_v40 = vpop.xlane.xlu0 %686 }
  0xbd   :  { %v175_v42 = vsel %vm169_vm0, %v168_v34, 0.0  ;;  %v198_v43 = vsel %vm192_vm1, %v168_v34, 0.0  ;;  %v691_v44 = vmul.f32 0.00390625, %v687_v40 }
  0xbe   :  { %v176_v46 = vadd.f32 %v175_v42, %v174_v6  ;;  %v199_v47 = vadd.f32 %v198_v43, %v197_v30  ;;  %v799_v48 = vsel %vm169_vm0, %v794_v39, 0.0  ;;  %v821_v49 = vsel %vm192_vm1, %v794_v39, 0.0  ;;  %v48_v43 = vld [vmem:[%s1933_s2] sm:$0xff] }
  0xbf   :  { %v800_v52 = vadd.f32 %v799_v48, %v798_v26  ;;  %v707_v53 = vmul.f32 %v691_v44, %v47_v25  ;;  %v703_v54 = vpop.xlane.xlu1 %702  ;;  %v822_v60 = vadd.f32 %v821_v49, %v820_v51 }
  0xc0   :  { %v177_v56 = vrot.slane %v176_v46, 4  ;;  %v200_v57 = vrot.slane %v199_v47, 4  ;;  %v795_v58 = vmul.f32 %v703_v54, %v55_v45  ;;  %v164_v59 = vpop.xlane.xlu0 %163 }
  0xc1   :  { %v713_v61 = vsel %vm169_vm0, %v707_v53, 0.0  ;;  %v735_v62 = vsel %vm192_vm1, %v707_v53, 0.0  ;;  %v258_v63 = vmul.f32 %v164_v59, %v55_v45 }
  0xc2   :  { %v178_v0 = vadd.f32 %v177_v56, %v176_v46  ;;  %v201_v1 = vadd.f32 %v200_v57, %v199_v47  ;;  %v714_v2 = vadd.f32 %v713_v61, %v712_v9  ;;  %v736_v3 = vadd.f32 %v735_v62, %v734_v50  ;;  %v49_v56 = vld [vmem:[%s1933_s2 + $0x8] sm:$0xff]  ;;  %v50_v57 = vld [vmem:[%s1933_s2 + $0x10] sm:$0xff]  ;;  %v56_v61 = vld [vmem:[%s1935_s4] sm:$0xff] }
  0xc3   :  { %v801_v4 = vsel %vm169_vm0, %v795_v58, 0.0  ;;  %v823_v5 = vsel %vm192_vm1, %v795_v58, 0.0  ;;  %v264_v6 = vsel %vm169_vm0, %v258_v63, 0.0  ;;  %v286_v7 = vsel %vm192_vm1, %v258_v63, 0.0  ;;  %v51_v58 = vld [vmem:[%s1933_s2 + $0x18] sm:$0xff] }
  0xc4   :  { %v179_v8 = vrot.slane %v178_v0, 2  ;;  %v715_v10 = vrot.slane %v714_v2, 4  ;;  %v737_v11 = vrot.slane %v736_v3, 4  ;;  %v802_v12 = vadd.f32 %v801_v4, %v800_v52 }
  0xc5   :  { %v824_v13 = vadd.f32 %v823_v5, %v822_v60  ;;  %v265_v14 = vadd.f32 %v264_v6, %v263_v38  ;;  %v287_v15 = vadd.f32 %v286_v7, %v285_v55  ;;  %v202_v17 = vrot.slane %v201_v1, 2 }
  0xc6   :  { %v180_v16 = vadd.f32 %v179_v8, %v178_v0  ;;  %v716_v18 = vadd.f32 %v715_v10, %v714_v2  ;;  %v738_v9 = vadd.f32 %v737_v11, %v736_v3  ;;  %v803_v19 = vrot.slane %v802_v12, 4  ;;  %v58_v2 = vld [vmem:[%s1935_s4 + $0x10] sm:$0xff]  ;;  %v57_v3 = vld [vmem:[%s1935_s4 + $0x8] sm:$0xff]  ;;  %v59_v11 = vld [vmem:[%s1935_s4 + $0x18] sm:$0xff] }
  0xc7   :  { %v825_v20 = vrot.slane %v824_v13, 4  ;;  %v266_v21 = vrot.slane %v265_v14, 4  ;;  %v288_v22 = vrot.slane %v287_v15, 4  ;;  %v203_v29 = vadd.f32 %v202_v17, %v201_v1 }
  0xc8   :  { %v181_v23 = vrot.slane %v180_v16, 1  ;;  %v717_v24 = vrot.slane %v716_v18, 2  ;;  %v804_v25 = vadd.f32 %v803_v19, %v802_v12  ;;  %v739_v31 = vrot.slane %v738_v9, 2 }
  0xc9   :  { %v826_v26 = vadd.f32 %v825_v20, %v824_v13  ;;  %v267_v27 = vadd.f32 %v266_v21, %v265_v14  ;;  %v289_v28 = vadd.f32 %v288_v22, %v287_v15  ;;  %v204_v44 = vrot.slane %v203_v29, 1 }
  0xca   :  { %v718_v30 = vadd.f32 %v717_v24, %v716_v18  ;;  %v182_v32 = vadd.f32 %v181_v23, %v180_v16  ;;  %v805_v33 = vrot.slane %v804_v25, 2  ;;  %v740_v45 = vadd.f32 %v739_v31, %v738_v9 }
  0xcb   :  { %v827_v34 = vrot.slane %v826_v26, 2  ;;  %v268_v35 = vrot.slane %v267_v27, 2  ;;  %v290_v36 = vrot.slane %v289_v28, 2  ;;  %v205_v59 = vadd.f32 %v204_v44, %v203_v29 }
  0xcc   :  { %v719_v37 = vrot.slane %v718_v30, 1  ;;  %v183_v38 = vmax.f32 %v182_v32, 0.0  ;;  %v806_v39 = vadd.f32 %v805_v33, %v804_v25  ;;  %v741_v60 = vrot.slane %v740_v45, 1 }
  0xcd   :  { %v828_v40 = vadd.f32 %v827_v34, %v826_v26  ;;  %v269_v41 = vadd.f32 %v268_v35, %v267_v27  ;;  %v291_v42 = vadd.f32 %v290_v36, %v289_v28  ;;  %v206_v15 = vmax.f32 %v205_v59, 0.0 }
  0xce   :  { %v807_v46 = vrot.slane %v806_v39, 1  ;;  %v1557_v50 = vmul.f32 %v183_v38, %v48_v43  ;;  %v720_v51 = vadd.f32 %v719_v37, %v718_v30  ;;  %v1577_v5 = vmul.f32 %v183_v38, %v49_v56 }
  0xcf   :  { %v829_v47 = vrot.slane %v828_v40, 1  ;;  %v270_v48 = vrot.slane %v269_v41, 1  ;;  %v292_v49 = vrot.slane %v291_v42, 1  ;;  %v1579_v6 = vmul.f32 %v183_v38, %v50_v57 }
  0xd0   :  { %v808_v52 = vadd.f32 %v807_v46, %v806_v39  ;;  %v721_v4 = vmax.f32 %v720_v51, 0.0  ;;  %v1581_v7 = vmul.f32 %v183_v38, %v51_v58  ;;  %v742_v12 = vadd.f32 %v741_v60, %v740_v45 }
  0xd1   :  { %v830_v53 = vadd.f32 %v829_v47, %v828_v40  ;;  %v271_v54 = vadd.f32 %v270_v48, %v269_v41  ;;  %v293_v55 = vadd.f32 %v292_v49, %v291_v42  ;;  %v207_v28 = vmul.f32 %v206_v15, %v48_v43 }
  0xd2   :  { %v809_v62 = vmax.f32 %v808_v52, 0.0  ;;  %v1590_v21 = vmul.f32 %v721_v4, %v48_v43  ;;  %v1592_v22 = vmul.f32 %v721_v4, %v49_v56  ;;  %v1594_v23 = vmul.f32 %v721_v4, %v50_v57 }
  0xd3   :  { %v831_v63 = vmax.f32 %v830_v53, 0.0  ;;  %v272_v0 = vmax.f32 %v271_v54, 0.0  ;;  %v294_v1 = vmax.f32 %v293_v55, 0.0  ;;  %v1598_v25 = vmul.f32 %v721_v4, %v51_v58 }
  0xd4   :  { %v810_v16 = vmul.f32 %v809_v62, %v56_v61  ;;  %v811_v19 = vmul.f32 %v809_v62, %v57_v3  ;;  %v1596_v24 = vmul.f32 %v809_v62, %v58_v2  ;;  %v1600_v26 = vmul.f32 %v809_v62, %v59_v11 }
  0xd5   :  { %v832_v8 = vmul.f32 %v831_v63, %v56_v61  ;;  %v295_v10 = vmul.f32 %v294_v1, %v56_v61  ;;  %v297_v13 = vmul.f32 %v294_v1, %v58_v2  ;;  %v296_v14 = vmul.f32 %v294_v1, %v57_v3 }
  0xd6   :  { %v273_v17 = vmul.f32 %v272_v0, %v56_v61  ;;  %v275_v18 = vmul.f32 %v272_v0, %v58_v2  ;;  %v274_v9 = vmul.f32 %v272_v0, %v57_v3  ;;  %v1588_v20 = vmul.f32 %v272_v0, %v59_v11 }
  0xd7   :  { %840 = vrot.lane.b32.xlu0 %v832_v8, %s1434_s26  ;;  %303 = vrot.lane.b32.xlu1 %v295_v10, %s1434_s26  ;;  %v833_v27 = vmul.f32 %v831_v63, %v57_v3  ;;  %v743_v29 = vmax.f32 %v742_v12, 0.0  ;;  %v298_v30 = vmul.f32 %v294_v1, %v59_v11  ;;  %v208_v32 = vmul.f32 %v206_v15, %v49_v56 }
  0xd8   :  { %v209_v33 = vmul.f32 %v206_v15, %v50_v57  ;;  %v210_v36 = vmul.f32 %v206_v15, %v51_v58  ;;  %v834_v37 = vmul.f32 %v831_v63, %v58_v2  ;;  %v835_v39 = vmul.f32 %v831_v63, %v59_v11 }
  0xd9   :  { %v744_v31 = vmul.f32 %v743_v29, %v48_v43  ;;  %v745_v34 = vmul.f32 %v743_v29, %v49_v56  ;;  %v746_v35 = vmul.f32 %v743_v29, %v50_v57  ;;  %v747_v38 = vmul.f32 %v743_v29, %v51_v58 }
  0xda   :  { %v1435_v40 = vmov 0  }
  0xdb   :  { %307 = vrot.lane.b32.xlu0 %v297_v13, %s1434_s26  ;;  %305 = vrot.lane.b32.xlu1 %v296_v14, %s1434_s26 }
  0xdc   :  { %1301 = vset.pattern.permute.xlu0 %v1435_v40  ;;  %1302 = vset.pattern.permute.xlu1 %v1435_v40 }
  0xdf   :  { %842 = vrot.lane.b32.xlu1 %v833_v27, %s1434_s26  ;;  %215 = vrot.lane.b32.xlu0 %v207_v28, %s1434_s26 }
  0xe3   :  { %309 = vrot.lane.b32.xlu1 %v298_v30, %s1434_s26  ;;  %752 = vrot.lane.b32.xlu0 %v744_v31, %s1434_s26 }
  0xe7   :  { %217 = vrot.lane.b32.xlu1 %v208_v32, %s1434_s26  ;;  %219 = vrot.lane.b32.xlu0 %v209_v33, %s1434_s26 }
  0xeb   :  { %754 = vrot.lane.b32.xlu1 %v745_v34, %s1434_s26  ;;  %756 = vrot.lane.b32.xlu0 %v746_v35, %s1434_s26 }
  0xef   :  { %221 = vrot.lane.b32.xlu1 %v210_v36, %s1434_s26  ;;  %844 = vrot.lane.b32.xlu0 %v834_v37, %s1434_s26 }
  0xf3   :  { %758 = vrot.lane.b32.xlu1 %v747_v38, %s1434_s26 }
  0xf7   :  { %846 = vrot.lane.b32.xlu1 %v835_v39, %s1434_s26 }
 0x149   :  { %v841_v41 = vpop.permute.xlu0 %840  ;;  %v304_v42 = vpop.permute.xlu1 %303 }
 0x14a   :  { %v852_v43 = vadd.f32 %v841_v41, %v810_v16  ;;  %v315_v44 = vadd.f32 %v304_v42, %v273_v17 }
 0x14c   :  { %v856_v45 = vsub.f32 0.0, %v852_v43  ;;  %v319_v46 = vsub.f32 0.0, %v315_v44 }
 0x14d   :  { %v308_v47 = vpop.permute.xlu0 %307  ;;  %v306_v48 = vpop.permute.xlu1 %305 }
 0x14e   :  { %v860_v49 = vmul.f32 1.442695, %v856_v45  ;;  %v317_v51 = vadd.f32 %v308_v47, %v275_v18  ;;  %v316_v52 = vadd.f32 %v306_v48, %v274_v9  ;;  %v323_v53 = vmul.f32 1.442695, %v319_v46 }
 0x150   :  { %v321_v54 = vsub.f32 0.0, %v317_v51  ;;  %1303 = vpow2.f32 %v860_v49  ;;  %v320_v55 = vsub.f32 0.0, %v316_v52 }
 0x151   :  { %v843_v56 = vpop.permute.xlu1 %842  ;;  %v216_v57 = vpop.permute.xlu0 %215  ;;  %1305 = vpow2.f32 %v323_v53 }
 0x152   :  { %v853_v58 = vadd.f32 %v843_v56, %v811_v19  ;;  %v227_v59 = vadd.f32 %v216_v57, %v1557_v50  ;;  %v327_v60 = vmul.f32 1.442695, %v321_v54  ;;  %v325_v62 = vmul.f32 1.442695, %v320_v55 }
 0x154   :  { %v231_v61 = vsub.f32 0.0, %v227_v59  ;;  %v857_v1 = vsub.f32 0.0, %v853_v58  ;;  %1307 = vpow2.f32 %v327_v60 }
 0x155   :  { %v310_v63 = vpop.permute.xlu1 %309  ;;  %v753_v0 = vpop.permute.xlu0 %752 }
 0x156   :  { %v235_v2 = vmul.f32 1.442695, %v231_v61  ;;  %v318_v3 = vadd.f32 %v310_v63, %v1588_v20  ;;  %v764_v4 = vadd.f32 %v753_v0, %v1590_v21  ;;  %v862_v50 = vmul.f32 1.442695, %v857_v1 }
 0x158   :  { %v768_v8 = vsub.f32 0.0, %v764_v4  ;;  %1309 = vpow2.f32 %v235_v2  ;;  %v322_v10 = vsub.f32 0.0, %v318_v3 }
 0x159   :  { %v218_v11 = vpop.permute.xlu1 %217  ;;  %v220_v12 = vpop.permute.xlu0 %219  ;;  %1311 = vpow2.f32 %v325_v62 }
 0x15a   :  { %v228_v13 = vadd.f32 %v218_v11, %v1577_v5  ;;  %v229_v14 = vadd.f32 %v220_v12, %v1579_v6  ;;  %v1304_v15 = vpop.eup %1303  ;;  %v772_v16 = vmul.f32 1.442695, %v768_v8  ;;  %v329_v9 = vmul.f32 1.442695, %v322_v10 }
 0x15b   :  { %v1306_v21 = vpop.eup %1305  ;;  %v868_v27 = vadd.f32 1.0, %v1304_v15  ;;  %1313 = vpow2.f32 %v862_v50 }
 0x15c   :  { %v232_v17 = vsub.f32 0.0, %v228_v13  ;;  %v233_v18 = vsub.f32 0.0, %v229_v14  ;;  %1315 = vpow2.f32 %v772_v16  ;;  %v331_v6 = vadd.f32 1.0, %v1306_v21 }
 0x15d   :  { %v755_v19 = vpop.permute.xlu1 %754  ;;  %v757_v20 = vpop.permute.xlu0 %756 }
 0x15e   :  { %v237_v28 = vmul.f32 1.442695, %v232_v17  ;;  %v765_v29 = vadd.f32 %v755_v19, %v1592_v22  ;;  %v239_v30 = vmul.f32 1.442695, %v233_v18  ;;  %v766_v31 = vadd.f32 %v757_v20, %v1594_v23  ;;  %v1308_v35 = vpop.eup %1307 }
 0x15f   :  { %v333_v43 = vadd.f32 1.0, %v1308_v35 }
 0x160   :  { %1317 = vpow2.f32 %v237_v28  ;;  %v769_v5 = vsub.f32 0.0, %v765_v29  ;;  %v770_v32 = vsub.f32 0.0, %v766_v31 }
 0x161   :  { %1319 = vpow2.f32 %v329_v9  ;;  %v222_v33 = vpop.permute.xlu1 %221  ;;  %v845_v34 = vpop.permute.xlu0 %844 }
 0x162   :  { %1321 = vrcp.f32 %v868_v27  ;;  %v774_v36 = vmul.f32 1.442695, %v769_v5  ;;  %v230_v37 = vadd.f32 %v222_v33, %v1581_v7  ;;  %v854_v38 = vadd.f32 %v845_v34, %v1596_v24  ;;  %v1310_v39 = vpop.eup %1309 }
 0x163   :  { %1323 = vpow2.f32 %v239_v30  ;;  %v776_v22 = vmul.f32 1.442695, %v770_v32  ;;  %v1312_v40 = vpop.eup %1311  ;;  %v243_v41 = vadd.f32 1.0, %v1310_v39 }
 0x164   :  { %1325 = vpow2.f32 %v774_v36  ;;  %v234_v23 = vsub.f32 0.0, %v230_v37  ;;  %v858_v42 = vsub.f32 0.0, %v854_v38  ;;  %v332_v48 = vadd.f32 1.0, %v1312_v40  ;;  %v63_v36 = vld [vmem:[%s1937_s6] sm:$0xff]  ;;  %v61_v40 = vld [vmem:[%s1936_s5 + $0x8] sm:$0xff] }
 0x165   :  { %1327 = vrcp.f32 %v331_v6  ;;  %v759_v44 = vpop.permute.xlu1 %758  ;;  %v1314_v7 = vpop.eup %1313  ;;  %507 = vmatprep.mubr.f32.mxu0 %v61_v40  ;;  %1040 = vmatprep.mubr.f32.mxu1 %v61_v40 }
 0x166   :  { %1329 = vrcp.f32 %v243_v41  ;;  %v241_v45 = vmul.f32 1.442695, %v234_v23  ;;  %v864_v46 = vmul.f32 1.442695, %v858_v42  ;;  %v767_v47 = vadd.f32 %v759_v44, %v1598_v25  ;;  %v1316_v49 = vpop.eup %1315  ;;  %v66_v41 = vld [vmem:[#allocation2 + $0x8] sm:$0xff]  ;;  %v68_v42 = vld [vmem:[#allocation2 + $0x18] sm:$0xff] }
 0x167   :  { %1331 = vpow2.f32 %v776_v22  ;;  %v780_v53 = vadd.f32 1.0, %v1316_v49  ;;  %v869_v57 = vadd.f32 1.0, %v1314_v7  ;;  %v64_v22 = vld [vmem:[%s1938_s7] sm:$0xff]  ;;  %v67_v44 = vld [vmem:[#allocation2 + $0x10] sm:$0xff]  ;;  %v607_v49 = vld [vmem:[#allocation2 + $0x258] sm:$0xff] }
 0x168   :  { %1333 = vpow2.f32 %v241_v45  ;;  %v771_v24 = vsub.f32 0.0, %v767_v47 }
 0x169   :  { %1335 = vrcp.f32 %v333_v43  ;;  %v847_v51 = vpop.permute.xlu1 %846  ;;  %v65_v43 = vld [vmem:[#allocation2] sm:$0xff] }
 0x16a   :  { %v1318_v52 = vpop.eup %1317  ;;  %1337 = vpow2.f32 %v864_v46  ;;  %v778_v54 = vmul.f32 1.442695, %v771_v24  ;;  %v855_v55 = vadd.f32 %v847_v51, %v1600_v26  ;;  %v605_v24 = vld [vmem:[#allocation2 + $0x248] sm:$0xff]  ;;  %v604_v51 = vld [vmem:[#allocation2 + $0x240] sm:$0xff] }
 0x16b   :  { %v1320_v56 = vpop.eup %1319  ;;  %1339 = vrcp.f32 %v332_v48  ;;  %v244_v58 = vadd.f32 1.0, %v1318_v52  ;;  %v606_v52 = vld [vmem:[#allocation2 + $0x250] sm:$0xff] }
 0x16c   :  { %v1322_v59 = vpop.eup %1321  ;;  %1341 = vrcp.f32 %v780_v53  ;;  %v859_v25 = vsub.f32 0.0, %v855_v55  ;;  %v334_v3 = vadd.f32 1.0, %v1320_v56 }
 0x16d   :  { %v1324_v60 = vpop.eup %1323  ;;  %1343 = vrcp.f32 %v244_v58 }
 0x16e   :  { %v1326_v61 = vpop.eup %1325  ;;  %v245_v62 = vadd.f32 1.0, %v1324_v60  ;;  %1345 = vpow2.f32 %v778_v54  ;;  %v866_v63 = vmul.f32 1.442695, %v859_v25  ;;  %v70_v60 = vld [vmem:[#allocation2 + $0x28] sm:$0xff] }
 0x16f   :  { %v1328_v0 = vpop.eup %1327  ;;  %1347 = vrcp.f32 %v869_v57  ;;  %v781_v1 = vadd.f32 1.0, %v1326_v61  ;;  %v76_v61 = vld [vmem:[#allocation2 + $0x58] sm:$0xff] }
 0x170   :  { %v1330_v2 = vpop.eup %1329  ;;  %1349 = vrcp.f32 %v245_v62  ;;  %v72_v62 = vld [vmem:[#allocation2 + $0x38] sm:$0xff] }
 0x171   :  { %v1332_v26 = vpop.eup %1331  ;;  %1351 = vrcp.f32 %v781_v1  ;;  %v343_v4 = vadd.f32 %v1330_v2, %v1328_v0  ;;  %v71_v0 = vld [vmem:[#allocation2 + $0x30] sm:$0xff] }
 0x172   :  { %v1334_v8 = vpop.eup %1333  ;;  %v782_v10 = vadd.f32 1.0, %v1332_v26  ;;  %1353 = vpow2.f32 %v866_v63  ;;  %v69_v63 = vld [vmem:[#allocation2 + $0x20] sm:$0xff] }
 0x173   :  { %v1336_v11 = vpop.eup %1335  ;;  %v246_v12 = vadd.f32 1.0, %v1334_v8  ;;  %349 = vperm.xlu0 %1301, %v343_v4   ;;  %1355 = vrcp.f32 %v334_v3  ;;  %v74_v4 = vld [vmem:[#allocation2 + $0x48] sm:$0xff] }
 0x174   :  { %v1338_v50 = vpop.eup %1337 }
 0x175   :  { %v1340_v13 = vpop.eup %1339  ;;  %1357 = vrcp.f32 %v246_v12  ;;  %v870_v14 = vadd.f32 1.0, %v1338_v50 }
 0x176   :  { %v1342_v15 = vpop.eup %1341  ;;  %1359 = vrcp.f32 %v782_v10 }
 0x177   :  { %v1344_v16 = vpop.eup %1343  ;;  %1361 = vrcp.f32 %v870_v14  ;;  %v880_v17 = vadd.f32 %v1342_v15, %v1322_v59  ;;  %v78_v14 = vld [vmem:[#allocation2 + $0x68] sm:$0xff]  ;;  %v80_v15 = vld [vmem:[#allocation2 + $0x78] sm:$0xff] }
 0x178   :  { %v1346_v18 = vpop.eup %1345  ;;  %v344_v9 = vadd.f32 %v1344_v16, %v1340_v13  ;;  %v75_v13 = vld [vmem:[#allocation2 + $0x50] sm:$0xff] }
 0x179   :  { %v1348_v19 = vpop.eup %1347  ;;  %v783_v21 = vadd.f32 1.0, %v1346_v18 }
 0x17a   :  { %v1350_v20 = vpop.eup %1349  ;;  %354 = vperm.xlu1 %1302, %v344_v9   ;;  %v73_v9 = vld [vmem:[#allocation2 + $0x40] sm:$0xff] }
 0x17b   :  { %v1352_v27 = vpop.eup %1351  ;;  %v345_v28 = vadd.f32 %v1350_v20, %v1336_v11  ;;  %1363 = vrcp.f32 %v783_v21 }
 0x17c   :  { %v1354_v29 = vpop.eup %1353  ;;  %v881_v30 = vadd.f32 %v1352_v27, %v1348_v19 }
 0x17d   :  { %v871_v31 = vadd.f32 1.0, %v1354_v29  ;;  %v1356_v5 = vpop.eup %1355  ;;  %v79_v29 = vld [vmem:[#allocation2 + $0x70] sm:$0xff] }
 0x17e   :  { %886 = vperm.xlu1 %1302, %v880_v17   ;;  %891 = vperm.xlu0 %1301, %v881_v30   ;;  %v84_v30 = vld [vmem:[#allocation2 + $0x98] sm:$0xff] }
 0x17f   :  { %v1358_v6 = vpop.eup %1357  ;;  %1365 = vrcp.f32 %v871_v31 }
 0x180   :  { %v1360_v32 = vpop.eup %1359  ;;  %v346_v33 = vadd.f32 %v1358_v6, %v1356_v5  ;;  %v82_v5 = vld [vmem:[#allocation2 + $0x88] sm:$0xff] }
 0x181   :  { %v1362_v34 = vpop.eup %1361  ;;  %v609_v6 = vld [vmem:[#allocation2 + $0x268] sm:$0xff] }
 0x182   :  { %359 = vperm.xlu1 %1302, %v345_v28   ;;  %364 = vperm.xlu0 %1301, %v346_v33   ;;  %v882_v35 = vadd.f32 %v1362_v34, %v1360_v32  ;;  %v77_v28 = vld [vmem:[#allocation2 + $0x60] sm:$0xff]  ;;  %v613_v32 = vld [vmem:[#allocation2 + $0x288] sm:$0xff]  ;;  %v615_v33 = vld [vmem:[#allocation2 + $0x298] sm:$0xff] }
 0x185   :  { %v1364_v37 = vpop.eup %1363 }
 0x186   :  { %896 = vperm.xlu1 %1302, %v882_v35  }
 0x189   :  { %v1366_v38 = vpop.eup %1365 }
 0x18a   :  { %587 = vperm.xlu1 %1302, %v63_v36   ;;  %v883_v39 = vadd.f32 %v1366_v38, %v1364_v37  ;;  %v611_v36 = vld [vmem:[#allocation2 + $0x278] sm:$0xff] }
 0x18c   :  { %901 = vperm.xlu0 %1301, %v883_v39   ;;  %v608_v39 = vld [vmem:[#allocation2 + $0x260] sm:$0xff] }
 0x190   :  { %594 = vperm.xlu0 %1301, %v64_v22   ;;  %v610_v22 = vld [vmem:[#allocation2 + $0x270] sm:$0xff] }
 0x1f2   :  { %v1636_v23 = vpop.permute.xlu0 %349 }
 0x1f3   :  { %v368_v46 = vmul.f32 %v1636_v23, %v66_v41  ;;  %v367_v48 = vmul.f32 %v1636_v23, %v65_v43  ;;  %v376_v18 = vmul.f32 %v1636_v23, %v74_v4  ;;  %v375_v31 = vmul.f32 %v1636_v23, %v73_v9  ;;  %v92_v4 = vld [vmem:[#allocation2 + $0xd8] sm:$0xff] }
 0x1f9   :  { %v1638_v45 = vpop.permute.xlu1 %354 }
 0x1fa   :  { %v370_v47 = vmul.f32 %v1638_v45, %v68_v42  ;;  %v369_v7 = vmul.f32 %v1638_v45, %v67_v44  ;;  %v378_v8 = vmul.f32 %v1638_v45, %v76_v61  ;;  %v377_v19 = vmul.f32 %v1638_v45, %v75_v13  ;;  %v83_v42 = vld [vmem:[#allocation2 + $0x90] sm:$0xff] }
 0x1fb   :  { %v386_v40 = vmul.f32 %v1638_v45, %v84_v30  ;;  %v384_v44 = vmul.f32 %v1636_v23, %v82_v5  ;;  %v394_v9 = vmul.f32 %v1638_v45, %v92_v4  ;;  %v620_v30 = vld [vmem:[#allocation2 + $0x2c0] sm:$0xff]  ;;  %v631_v4 = vld [vmem:[#allocation2 + $0x318] sm:$0xff] }
 0x1fc   :  { %v1146_v53 = vpack.c.bf16 %v370_v47, %v368_v46  ;;  %v1148_v54 = vpack.c.bf16 %v369_v7, %v367_v48  ;;  %v1154_v20 = vpack.c.bf16 %v378_v8, %v376_v18  ;;  %v1156_v35 = vpack.c.bf16 %v377_v19, %v375_v31  ;;  %v86_v48 = vld [vmem:[#allocation2 + $0xa8] sm:$0xff]  ;;  %v88_v7 = vld [vmem:[#allocation2 + $0xb8] sm:$0xff] }
 0x1fd   :  { %v1644_v55 = vpop.permute.xlu1 %886  ;;  %v1646_v56 = vpop.permute.xlu0 %891  ;;  %v621_v19 = vld [vmem:[#allocation2 + $0x2c8] sm:$0xff] }
 0x1fe   :  { %1147 = vmatprep.subr.bf16.mxu0 %v1146_v53  ;;  %v905_v57 = vmul.f32 %v1644_v55, %v605_v24  ;;  %v907_v58 = vmul.f32 %v1646_v56, %v607_v49  ;;  %v904_v59 = vmul.f32 %v1644_v55, %v604_v51  ;;  %v906_v25 = vmul.f32 %v1646_v56, %v606_v52  ;;  %v81_v53 = vld [vmem:[#allocation2 + $0x80] sm:$0xff] }
 0x1ff   :  { %1149 = vmatpush1.bf16.msra.mxu0 %v1148_v54  ;;  %v913_v46 = vmul.f32 %v1644_v55, %v613_v32  ;;  %v915_v47 = vmul.f32 %v1646_v56, %v615_v33  ;;  %v612_v54 = vld [vmem:[#allocation2 + $0x280] sm:$0xff]  ;;  %v383_v8 = vmul.f32 %v1636_v23, %v81_v53  ;;  %v622_v32 = vld [vmem:[#allocation2 + $0x2d0] sm:$0xff]  ;;  %v94_v33 = vld [vmem:[#allocation2 + $0xe8] sm:$0xff] }
 0x200   :  { %v1218_v1 = vpack.c.bf16 %v907_v58, %v905_v57  ;;  %v1220_v2 = vpack.c.bf16 %v906_v25, %v904_v59  ;;  %v614_v57 = vld [vmem:[#allocation2 + $0x290] sm:$0xff]  ;;  %v1162_v59 = vpack.c.bf16 %v386_v40, %v384_v44  ;;  %v385_v25 = vmul.f32 %v1638_v45, %v83_v42  ;;  %v627_v44 = vld [vmem:[#allocation2 + $0x2f8] sm:$0xff]  ;;  %v130_v53 = vld [vmem:[#allocation2 + $0x208] sm:$0xff] }
 0x201   :  { %v1652_v3 = vpop.permute.xlu1 %359  ;;  %v1654_v26 = vpop.permute.xlu0 %364 }
 0x202   :  { %1219 = vmatprep.subr.bf16.mxu1 %v1218_v1  ;;  %v372_v10 = vmul.f32 %v1652_v3, %v70_v60  ;;  %v374_v11 = vmul.f32 %v1654_v26, %v72_v62  ;;  %v371_v12 = vmul.f32 %v1652_v3, %v69_v63  ;;  %v373_v50 = vmul.f32 %v1654_v26, %v71_v0  ;;  %v619_v60 = vld [vmem:[#allocation2 + $0x2b8] sm:$0xff]  ;;  %v85_v1 = vld [vmem:[#allocation2 + $0xa0] sm:$0xff] }
 0x203   :  { %1221 = vmatpush1.bf16.msra.mxu1 %v1220_v2  ;;  %v380_v21 = vmul.f32 %v1652_v3, %v78_v14  ;;  %v382_v27 = vmul.f32 %v1654_v26, %v80_v15  ;;  %v379_v37 = vmul.f32 %v1652_v3, %v77_v28  ;;  %v381_v38 = vmul.f32 %v1654_v26, %v79_v29  ;;  %v87_v2 = vld [vmem:[#allocation2 + $0xb0] sm:$0xff]  ;;  %v90_v15 = vld [vmem:[#allocation2 + $0xc8] sm:$0xff]  ;;  %v616_v28 = vld [vmem:[#allocation2 + $0x2a0] sm:$0xff] }
 0x204   :  { %v1150_v16 = vpack.c.bf16 %v374_v11, %v372_v10  ;;  %v1152_v17 = vpack.c.bf16 %v373_v50, %v371_v12  ;;  %v388_v63 = vmul.f32 %v1652_v3, %v86_v48  ;;  %v390_v0 = vmul.f32 %v1654_v26, %v88_v7  ;;  %v617_v12 = vld [vmem:[#allocation2 + $0x2a8] sm:$0xff]  ;;  %v618_v14 = vld [vmem:[#allocation2 + $0x2b0] sm:$0xff] }
 0x205   :  { %v1666_v34 = vpop.permute.xlu1 %896  ;;  %v1158_v41 = vpack.c.bf16 %v382_v27, %v380_v21  ;;  %v1160_v58 = vpack.c.bf16 %v381_v38, %v379_v37  ;;  %v912_v10 = vmul.f32 %v1644_v55, %v612_v54  ;;  %v914_v11 = vmul.f32 %v1646_v56, %v614_v57  ;;  %v91_v29 = vld [vmem:[#allocation2 + $0xd0] sm:$0xff] }
 0x206   :  { %1151 = vmatprep.subr.bf16.mxu0 %v1150_v16  ;;  %v909_v24 = vmul.f32 %v1666_v34, %v609_v6  ;;  %v908_v51 = vmul.f32 %v1666_v34, %v608_v39  ;;  %v1226_v50 = vpack.c.bf16 %v915_v47, %v913_v46  ;;  %v1164_v16 = vpack.c.bf16 %v385_v25, %v383_v8  ;;  %v89_v39 = vld [vmem:[#allocation2 + $0xc0] sm:$0xff]  ;;  %v106_v46 = vld [vmem:[#allocation2 + $0x148] sm:$0xff] }
 0x207   :  { %1153 = vmatpush1.bf16.msra.mxu0 %v1152_v17  ;;  %v387_v17 = vmul.f32 %v1652_v3, %v85_v1  ;;  %v389_v18 = vmul.f32 %v1654_v26, %v87_v2  ;;  %v1166_v21 = vpack.c.bf16 %v390_v0, %v388_v63  ;;  %v917_v27 = vmul.f32 %v1666_v34, %v617_v12  ;;  %v105_v47 = vld [vmem:[#allocation2 + $0x140] sm:$0xff]  ;;  %v1367_v25 = vld [vmem:[#allocation2 + $0x108] sm:$0xff]  ;;  %v626_v1 = vld [vmem:[#allocation2 + $0x2f0] sm:$0xff] }
 0x208   :  { %1155 = vmatprep.subr.bf16.mxu0 %v1154_v20  ;;  %v623_v20 = vld [vmem:[#allocation2 + $0x2d8] sm:$0xff]  ;;  %v1228_v31 = vpack.c.bf16 %v914_v11, %v912_v10  ;;  %v392_v6 = vmul.f32 %v1636_v23, %v90_v15  ;;  %v921_v37 = vmul.f32 %v1644_v55, %v621_v19  ;;  %v916_v40 = vmul.f32 %v1666_v34, %v616_v28  ;;  %v629_v2 = vld [vmem:[#allocation2 + $0x308] sm:$0xff] }
 0x209   :  { %v923_v38 = vmul.f32 %v1646_v56, %v623_v20  ;;  %v393_v42 = vmul.f32 %v1638_v45, %v91_v29  ;;  %v920_v48 = vmul.f32 %v1644_v55, %v620_v30  ;;  %v922_v7 = vmul.f32 %v1646_v56, %v622_v32  ;;  %v635_v20 = vld [vmem:[#allocation2 + $0x338] sm:$0xff]  ;;  %v634_v30 = vld [vmem:[#allocation2 + $0x330] sm:$0xff] }
 0x20a   :  { %v391_v57 = vmul.f32 %v1636_v23, %v89_v39  ;;  %v1708_v8 = vmul.f32 %v1636_v23, %v106_v46  ;;  %v1711_v10 = vmul.f32 %v1636_v23, %v105_v47  ;;  %v1716_v15 = vmul.f32 %v1636_v23, %v130_v53  ;;  %v1373_v47 = vld [vmem:[#allocation2 + $0x120] sm:$0xff] }
 0x20b   :  { %v1671_v43 = vpop.permute.xlu0 %901  ;;  %1157 = vmatpush1.bf16.msra.mxu0 %v1156_v35  ;;  %v96_v35 = vld [vmem:[#allocation2 + $0xf8] sm:$0xff]  ;;  %v1234_v63 = vpack.c.bf16 %v923_v38, %v921_v37  ;;  %v929_v28 = vmul.f32 %v1644_v55, %v629_v2  ;;  %v931_v29 = vmul.f32 %v1646_v56, %v631_v4  ;;  %v1371_v38 = vld [vmem:[#allocation2 + $0x128] sm:$0xff] }
 0x20c   :  { %1159 = vmatprep.subr.bf16.mxu0 %v1158_v41  ;;  %v911_v49 = vmul.f32 %v1671_v43, %v611_v36  ;;  %v910_v52 = vmul.f32 %v1671_v43, %v610_v22  ;;  %v919_v13 = vmul.f32 %v1671_v43, %v619_v60  ;;  %v918_v5 = vmul.f32 %v1671_v43, %v618_v14  ;;  %v630_v14 = vld [vmem:[#allocation2 + $0x310] sm:$0xff] }
 0x20d   :  { %v1168_v22 = vpack.c.bf16 %v389_v18, %v387_v17  ;;  %v1170_v41 = vpack.c.bf16 %v394_v9, %v392_v6  ;;  %v400_v60 = vmul.f32 %v1367_v25, %v1636_v23  ;;  %v927_v0 = vmul.f32 %v1671_v43, %v627_v44  ;;  %v1369_v9 = vld [vmem:[#allocation2 + $0x118] sm:$0xff] }
 0x20e   :  { %v1222_v61 = vpack.c.bf16 %v911_v49, %v909_v24  ;;  %v1224_v62 = vpack.c.bf16 %v910_v52, %v908_v51  ;;  %v1230_v36 = vpack.c.bf16 %v919_v13, %v917_v27  ;;  %v396_v24 = vmul.f32 %v1652_v3, %v94_v33  ;;  %v93_v51 = vld [vmem:[#allocation2 + $0xe0] sm:$0xff]  ;;  %v95_v52 = vld [vmem:[#allocation2 + $0xf0] sm:$0xff]  ;;  %v108_v44 = vld [vmem:[#allocation2 + $0x158] sm:$0xff] }
 0x20f   :  { %1161 = vmatpush1.bf16.msra.mxu0 %v1160_v58  ;;  %v398_v49 = vmul.f32 %v1654_v26, %v96_v35  ;;  %v1232_v54 = vpack.c.bf16 %v918_v5, %v916_v40  ;;  %v625_v58 = vld [vmem:[#allocation2 + $0x2e8] sm:$0xff]  ;;  %v1172_v11 = vpack.c.bf16 %v393_v42, %v391_v57  ;;  %v395_v12 = vmul.f32 %v1652_v3, %v93_v51  ;;  %v628_v13 = vld [vmem:[#allocation2 + $0x300] sm:$0xff]  ;;  %v1370_v5 = vld [vmem:[#allocation2 + $0x110] sm:$0xff] }
 0x210   :  { %1223 = vmatprep.subr.bf16.mxu1 %v1222_v61  ;;  %1163 = vmatprep.subr.bf16.mxu0 %v1162_v59  ;;  %v624_v59 = vld [vmem:[#allocation2 + $0x2e0] sm:$0xff]  ;;  %v925_v18 = vmul.f32 %v1666_v34, %v625_v58  ;;  %v402_v19 = vmul.f32 %v1369_v9, %v1638_v45  ;;  %v926_v27 = vmul.f32 %v1671_v43, %v626_v1  ;;  %v633_v35 = vld [vmem:[#allocation2 + $0x328] sm:$0xff]  ;;  %v132_v57 = vld [vmem:[#allocation2 + $0x218] sm:$0xff] }
 0x211   :  { %1225 = vmatpush1.bf16.msra.mxu1 %v1224_v62  ;;  %v1368_v61 = vld [vmem:[#allocation2 + $0x100] sm:$0xff]  ;;  %v1174_v17 = vpack.c.bf16 %v398_v49, %v396_v24  ;;  %v401_v6 = vmul.f32 %v1370_v5, %v1638_v45  ;;  %v1726_v32 = vmul.f32 %v1644_v55, %v628_v13  ;;  %v1729_v33 = vmul.f32 %v1646_v56, %v630_v14  ;;  %v131_v1 = vld [vmem:[#allocation2 + $0x210] sm:$0xff]  ;;  %v110_v9 = vld [vmem:[#allocation2 + $0x168] sm:$0xff] }
 0x212   :  { %1227 = vmatprep.subr.bf16.mxu1 %v1226_v50  ;;  %v1704_v62 = vmul.f32 %v1368_v61, %v1636_v23  ;;  %v397_v50 = vmul.f32 %v1654_v26, %v95_v52  ;;  %v404_v39 = vmul.f32 %v1371_v38, %v1652_v3  ;;  %v632_v42 = vld [vmem:[#allocation2 + $0x320] sm:$0xff]  ;;  %v1178_v46 = vpack.c.bf16 %v402_v19, %v400_v60  ;;  %v662_v14 = vld [vmem:[#allocation2 + $0x410] sm:$0xff]  ;;  %v112_v19 = vld [vmem:[#allocation2 + $0x178] sm:$0xff] }
 0x213   :  { %1165 = vmatpush1.bf16.msra.mxu0 %v1164_v16  ;;  %v1236_v16 = vpack.c.bf16 %v922_v7, %v920_v48  ;;  %v1737_v48 = vmul.f32 %v1373_v47, %v1652_v3  ;;  %v1374_v7 = vld [vmem:[#allocation2 + $0x130] sm:$0xff]  ;;  %v1743_v49 = vmul.f32 %v1671_v43, %v634_v30  ;;  %v1242_v52 = vpack.c.bf16 %v931_v29, %v929_v28  ;;  %v660_v13 = vld [vmem:[#allocation2 + $0x400] sm:$0xff] }
 0x214   :  { %1167 = vmatprep.subr.bf16.mxu0 %v1166_v21  ;;  %v924_v21 = vmul.f32 %v1666_v34, %v624_v59  ;;  %v1176_v37 = vpack.c.bf16 %v397_v50, %v395_v12  ;;  %v1740_v24 = vmul.f32 %v1374_v7, %v1654_v26  ;;  %v933_v53 = vmul.f32 %v1666_v34, %v633_v35  ;;  %v111_v47 = vld [vmem:[#allocation2 + $0x170] sm:$0xff] }
 0x215   :  { %1229 = vmatpush1.bf16.msra.mxu1 %v1228_v31  ;;  %v1238_v31 = vpack.c.bf16 %v927_v0, %v925_v18  ;;  %v1180_v59 = vpack.c.bf16 %v401_v6, %v1704_v62  ;;  %v1244_v25 = vpack.c.bf16 %v1729_v33, %v1726_v32  ;;  %v1753_v60 = vmul.f32 %v1666_v34, %v632_v42  ;;  %v663_v0 = vld [vmem:[#allocation2 + $0x418] sm:$0xff]  ;;  %v109_v6 = vld [vmem:[#allocation2 + $0x160] sm:$0xff] }
 0x216   :  { %1231 = vmatprep.subr.bf16.mxu1 %v1230_v36  ;;  %v129_v36 = vld [vmem:[#allocation2 + $0x200] sm:$0xff]  ;;  %v1240_v51 = vpack.c.bf16 %v926_v27, %v924_v21  ;;  %v410_v61 = vmul.f32 %v1638_v45, %v108_v44  ;;  %v1376_v62 = vld [vmem:[#allocation2 + $0x358] sm:$0xff]  ;;  %v1780_v29 = vmul.f32 %v1646_v56, %v663_v0  ;;  %v1783_v30 = vmul.f32 %v1638_v45, %v131_v1  ;;  %v1378_v44 = vld [vmem:[#allocation2 + $0x350] sm:$0xff] }
 0x217   :  { %1169 = vmatpush1.bf16.msra.mxu0 %v1168_v22  ;;  %v1372_v22 = vld [vmem:[#allocation2 + $0x138] sm:$0xff]  ;;  %v1747_v58 = vmul.f32 %v1636_v23, %v129_v36  ;;  %v1761_v50 = vmul.f32 %v1376_v62, %v1646_v56  ;;  %v1377_v21 = vld [vmem:[#allocation2 + $0x340] sm:$0xff]  ;;  %v1789_v33 = vmul.f32 %v1644_v55, %v660_v13  ;;  %v1792_v35 = vmul.f32 %v1646_v56, %v662_v14  ;;  %v135_v36 = vld [vmem:[#allocation2 + $0x230] sm:$0xff] }
 0x218   :  { %1171 = vmatprep.subr.bf16.mxu0 %v1170_v41  ;;  %v406_v40 = vmul.f32 %v1372_v22, %v1654_v26  ;;  %v1734_v41 = vmul.f32 %v1671_v43, %v635_v20  ;;  %v1771_v20 = vmul.f32 %v1638_v45, %v132_v57  ;;  %v1774_v27 = vmul.f32 %v1377_v21, %v1644_v55  ;;  %v669_v22 = vld [vmem:[#allocation2 + $0x448] sm:$0xff]  ;;  %v116_v57 = vld [vmem:[#allocation2 + $0x198] sm:$0xff]  ;;  %v115_v14 = vld [vmem:[#allocation2 + $0x190] sm:$0xff] }
 0x219   :  { %1233 = vmatpush1.bf16.msra.mxu1 %v1232_v54  ;;  %v107_v54 = vld [vmem:[#allocation2 + $0x150] sm:$0xff]  ;;  %v1186_v5 = vpack.c.bf16 %v410_v61, %v1708_v8  ;;  %v414_v38 = vmul.f32 %v1654_v26, %v112_v19  ;;  %v1212_v8 = vpack.c.bf16 %v1783_v30, %v1747_v58  ;;  %v411_v61 = vmul.f32 %v1652_v3, %v109_v6  ;;  %v120_v6 = vld [vmem:[#allocation2 + $0x1b8] sm:$0xff] }
 0x21a   :  { %1235 = vmatprep.subr.bf16.mxu1 %v1234_v63  ;;  %v661_v63 = vld [vmem:[#allocation2 + $0x408] sm:$0xff]  ;;  %v1182_v2 = vpack.c.bf16 %v406_v40, %v404_v39  ;;  %v1246_v4 = vpack.c.bf16 %v1734_v41, %v933_v53  ;;  %v1768_v18 = vmul.f32 %v1638_v45, %v107_v54  ;;  %v1210_v32 = vpack.c.bf16 %v1771_v20, %v1716_v15  ;;  %v671_v40 = vld [vmem:[#allocation2 + $0x458] sm:$0xff]  ;;  %v668_v41 = vld [vmem:[#allocation2 + $0x440] sm:$0xff] }
 0x21b   :  { %1173 = vmatpush1.bf16.msra.mxu0 %v1172_v11  ;;  %v1375_v11 = vld [vmem:[#allocation2 + $0x348] sm:$0xff]  ;;  %v1777_v28 = vmul.f32 %v1644_v55, %v661_v63  ;;  %v1380_v53 = vld [vmem:[#allocation2 + $0x378] sm:$0xff]  ;;  %v1817_v0 = vmul.f32 %v1644_v55, %v669_v22  ;;  %v1823_v1 = vmul.f32 %v1644_v55, %v668_v41  ;;  %v418_v13 = vmul.f32 %v1638_v45, %v116_v57  ;;  %v1381_v19 = vld [vmem:[#allocation2 + $0x370] sm:$0xff] }
 0x21c   :  { %1175 = vmatprep.subr.bf16.mxu0 %v1174_v17  ;;  %v1758_v12 = vmul.f32 %v1375_v11, %v1644_v55  ;;  %v1248_v17 = vpack.c.bf16 %v1743_v49, %v1753_v60  ;;  %v1188_v49 = vpack.c.bf16 %v1768_v18, %v1711_v10  ;;  %v943_v54 = vmul.f32 %v1380_v53, %v1671_v43  ;;  %v674_v60 = vld [vmem:[#allocation2 + $0x470] sm:$0xff]  ;;  %v114_v63 = vld [vmem:[#allocation2 + $0x188] sm:$0xff]  ;;  %v644_v41 = vld [vmem:[#allocation2 + $0x380] sm:$0xff] }
 0x21d   :  { %1237 = vmatpush1.bf16.msra.mxu1 %v1236_v16  ;;  %v1184_v16 = vpack.c.bf16 %v1740_v24, %v1737_v48  ;;  %v1274_v39 = vpack.c.bf16 %v1780_v29, %v1777_v28  ;;  %v1276_v48 = vpack.c.bf16 %v1792_v35, %v1789_v33  ;;  %v670_v24 = vld [vmem:[#allocation2 + $0x450] sm:$0xff]  ;;  %v1820_v10 = vmul.f32 %v1646_v56, %v671_v40  ;;  %v645_v11 = vld [vmem:[#allocation2 + $0x388] sm:$0xff]  ;;  %v113_v40 = vld [vmem:[#allocation2 + $0x180] sm:$0xff] }
 0x21e   :  { %1239 = vmatprep.subr.bf16.mxu1 %v1238_v31  ;;  %v133_v31 = vld [vmem:[#allocation2 + $0x220] sm:$0xff]  ;;  %v1250_v42 = vpack.c.bf16 %v1761_v50, %v1758_v12  ;;  %v647_v12 = vld [vmem:[#allocation2 + $0x398] sm:$0xff]  ;;  %v1829_v50 = vmul.f32 %v1646_v56, %v670_v24  ;;  %v1838_v18 = vmul.f32 %v1671_v43, %v674_v60  ;;  %v942_v21 = vmul.f32 %v1381_v19, %v1671_v43  ;;  %v119_v57 = vld [vmem:[#allocation2 + $0x1b0] sm:$0xff] }
 0x21f   :  { %1177 = vmatpush1.bf16.msra.mxu0 %v1176_v37  ;;  %v412_v37 = vmul.f32 %v1652_v3, %v110_v9  ;;  %v1806_v7 = vmul.f32 %v1652_v3, %v133_v31  ;;  %v416_v31 = vmul.f32 %v1636_v23, %v114_v63  ;;  %v947_v22 = vmul.f32 %v1646_v56, %v647_v12  ;;  %v675_v29 = vld [vmem:[#allocation2 + $0x478] sm:$0xff]  ;;  %v62_v30 = vld [vmem:[%s1936_s5 + $0x10] sm:$0xff] }
 0x220   :  { %1179 = vmatprep.subr.bf16.mxu0 %v1178_v46  ;;  %v938_v46 = vmul.f32 %v1378_v44, %v1646_v56  ;;  %v417_v24 = vmul.f32 %v1638_v45, %v115_v14  ;;  %v422_v53 = vmul.f32 %v1654_v26, %v120_v6  ;;  %v415_v60 = vmul.f32 %v1636_v23, %v113_v40  ;;  %v648_v40 = vld [vmem:[#allocation2 + $0x3a0] sm:$0xff] }
 0x221   :  { %1241 = vmatpush1.bf16.msra.mxu1 %v1240_v51  ;;  %v1379_v51 = vld [vmem:[#allocation2 + $0x368] sm:$0xff]  ;;  %v421_v19 = vmul.f32 %v1654_v26, %v119_v57  ;;  %v1436_v20 = vmov 0.0  }
 0x222   :  { %1243 = vmatprep.subr.bf16.mxu1 %v1242_v52  ;;  %v941_v52 = vmul.f32 %v1379_v51, %v1666_v34  ;;  %v1252_v9 = vpack.c.bf16 %v938_v46, %v1774_v27  ;;  %v1382_v46 = vld [vmem:[#allocation2 + $0x360] sm:$0xff]  ;;  %v1194_v51 = vpack.c.bf16 %v418_v13, %v416_v31  ;;  %v650_v13 = vld [vmem:[#allocation2 + $0x3b0] sm:$0xff]  ;;  %v1196_v14 = vpack.c.bf16 %v417_v24, %v415_v60  ;;  %v653_v31 = vld [vmem:[#allocation2 + $0x3c8] sm:$0xff] }
 0x223   :  { %1181 = vmatpush1.bf16.msra.mxu0 %v1180_v59  ;;  %v1813_v59 = vmul.f32 %v1654_v26, %v135_v36  ;;  %v1284_v36 = vpack.c.bf16 %v1829_v50, %v1823_v1 }
 0x224   :  { %1183 = vmatprep.subr.bf16.mxu0 %v1182_v2  ;;  %v1190_v2 = vpack.c.bf16 %v414_v38, %v412_v37  ;;  %v1254_v37 = vpack.c.bf16 %v943_v54, %v941_v52  ;;  %v945_v38 = vmul.f32 %v1644_v55, %v645_v11  ;;  %v117_v54 = vld [vmem:[#allocation2 + $0x1a0] sm:$0xff] }
 0x225   :  { %1245 = vmatpush1.bf16.msra.mxu1 %v1244_v25  ;;  %v672_v25 = vld [vmem:[#allocation2 + $0x460] sm:$0xff]  ;;  %v1216_v62 = vpack.c.bf16 %v1813_v59, %v1806_v7 }
 0x226   :  { %1247 = vmatprep.subr.bf16.mxu1 %v1246_v4  ;;  %v413_v4 = vmul.f32 %v1654_v26, %v111_v47  ;;  %v940_v47 = vmul.f32 %v1382_v46, %v1666_v34  ;;  %v1258_v11 = vpack.c.bf16 %v947_v22, %v945_v38  ;;  %v123_v38 = vld [vmem:[#allocation2 + $0x1d0] sm:$0xff]  ;;  %v128_v46 = vld [vmem:[#allocation2 + $0x1f8] sm:$0xff] }
 0x227   :  { %1185 = vmatpush1.bf16.msra.mxu0 %v1184_v16  ;;  %v1282_v16 = vpack.c.bf16 %v1820_v10, %v1817_v0  ;;  %v425_v60 = vmul.f32 %v1638_v45, %v123_v38  ;;  %v656_v38 = vld [vmem:[#allocation2 + $0x3e0] sm:$0xff]  ;;  %v595_v0 = vpop.permute.xlu0 %594 }
 0x228   :  { %1187 = vmatprep.subr.bf16.mxu0 %v1186_v5  ;;  %v118_v5 = vld [vmem:[#allocation2 + $0x1a8] sm:$0xff]  ;;  %v1192_v44 = vpack.c.bf16 %v413_v4, %v411_v61  ;;  %v944_v61 = vmul.f32 %v1644_v55, %v644_v41  ;;  %v124_v4 = vld [vmem:[#allocation2 + $0x1d8] sm:$0xff] }
 0x229   :  { %1249 = vmatpush1.bf16.msra.mxu1 %v1248_v17  ;;  %v1835_v17 = vmul.f32 %v1666_v34, %v672_v25  ;;  %v420_v52 = vmul.f32 %v1652_v3, %v118_v5  ;;  %v1256_v25 = vpack.c.bf16 %v942_v21, %v940_v47  ;;  %v122_v21 = vld [vmem:[#allocation2 + $0x1c8] sm:$0xff]  ;;  %v655_v5 = vld [vmem:[#allocation2 + $0x3d8] sm:$0xff]  ;;  %v426_v41 = vmul.f32 %v1638_v45, %v124_v4 }
 0x22a   :  { %1251 = vmatprep.subr.bf16.mxu1 %v1250_v42  ;;  %v646_v42 = vld [vmem:[#allocation2 + $0x390] sm:$0xff]  ;;  %v424_v24 = vmul.f32 %v1636_v23, %v122_v21  ;;  %v430_v4 = vmul.f32 %v1654_v26, %v128_v46 }
 0x22b   :  { %1189 = vmatpush1.bf16.msra.mxu0 %v1188_v49  ;;  %v1288_v27 = vpack.c.bf16 %v1838_v18, %v1835_v17  ;;  %v651_v49 = vld [vmem:[#allocation2 + $0x3b8] sm:$0xff]  ;;  %v946_v63 = vmul.f32 %v1646_v56, %v646_v42  ;;  %v1198_v6 = vpack.c.bf16 %v422_v53, %v420_v52  ;;  %v950_v42 = vmul.f32 %v1671_v43, %v650_v13  ;;  %v121_v52 = vld [vmem:[#allocation2 + $0x1c0] sm:$0xff] }
 0x22c   :  { %1191 = vmatprep.subr.bf16.mxu0 %v1190_v2  ;;  %v649_v2 = vld [vmem:[#allocation2 + $0x3a8] sm:$0xff]  ;;  %v951_v12 = vmul.f32 %v1671_v43, %v651_v49  ;;  %v953_v49 = vmul.f32 %v1644_v55, %v653_v31  ;;  %v652_v53 = vld [vmem:[#allocation2 + $0x3c0] sm:$0xff] }
 0x22d   :  { %1253 = vmatpush1.bf16.msra.mxu1 %v1252_v9  ;;  %v419_v9 = vmul.f32 %v1652_v3, %v117_v54  ;;  %v1260_v22 = vpack.c.bf16 %v946_v63, %v944_v61  ;;  %v654_v54 = vld [vmem:[#allocation2 + $0x3d0] sm:$0xff]  ;;  %v659_v61 = vld [vmem:[#allocation2 + $0x3f8] sm:$0xff]  ;;  %v1202_v63 = vpack.c.bf16 %v426_v41, %v424_v24  ;;  %v952_v21 = vmul.f32 %v1644_v55, %v652_v53  ;;  %v60_v53 = vld [vmem:[%s1936_s5] sm:$0xff]  ;;  %s1437_s5 = smov [#allocation5]  }
 0x22e   :  { %1255 = vmatprep.subr.bf16.mxu1 %v1254_v37  ;;  %v949_v37 = vmul.f32 %v1666_v34, %v649_v2  ;;  %v959_v31 = vmul.f32 %v1671_v43, %v659_v61  ;;  %v667_v24 = vld [vmem:[#allocation2 + $0x438] sm:$0xff]  ;;  %s1132_s3 = sshll.u32 %s1437_s5, 4  ;;  %s1133_s3 = int_to_ptr.vmem [resolvable:$true] %s1132_s3 }
 0x22f   :  { %1193 = vmatpush1.bf16.msra.mxu0 %v1192_v44  ;;  %v126_v44 = vld [vmem:[#allocation2 + $0x1e8] sm:$0xff]  ;;  %v1200_v57 = vpack.c.bf16 %v421_v19, %v419_v9  ;;  %v954_v9 = vmul.f32 %v1646_v56, %v654_v54  ;;  %s1405_s11 = scalar_lea.vmem %s1133_s3, 512  ;;  %p1410_p9 = scmp.lt.s32.totalorder %s1133_s3, %s1133_s3 }
 0x230   :  { %1195 = vmatprep.subr.bf16.mxu0 %v1194_v51  ;;  %v1262_v47 = vpack.c.bf16 %v951_v12, %v949_v37  ;;  %v955_v51 = vmul.f32 %v1646_v56, %v655_v5  ;;  %v428_v2 = vmul.f32 %v1652_v3, %v126_v44  ;;  %v127_v12 = vld [vmem:[#allocation2 + $0x1f0] sm:$0xff]  ;;  %v657_v19 = vld [vmem:[#allocation2 + $0x3e8] sm:$0xff]  ;;  %p1406_p8 = scmp.ne.s32.totalorder %s1133_s3, %s1405_s11  ;;  %p1411_p10 = scmp.lt.s32.totalorder %s1405_s11, %s1405_s11 }
 0x231   :  { %1257 = vmatpush1.bf16.msra.mxu1 %v1256_v25  ;;  %v948_v25 = vmul.f32 %v1666_v34, %v648_v40  ;;  %v658_v5 = vld [vmem:[#allocation2 + $0x3f0] sm:$0xff]  ;;  %v429_v40 = vmul.f32 %v1654_v26, %v127_v12  ;;  %v1268_v55 = vpack.c.bf16 %v954_v9, %v952_v21  ;;  %v665_v54 = vld [vmem:[#allocation2 + $0x428] sm:$0xff] }
 0x232   :  { %1259 = vmatprep.subr.bf16.mxu1 %v1258_v11  ;;  %v125_v11 = vld [vmem:[#allocation2 + $0x1e0] sm:$0xff]  ;;  %v1266_v45 = vpack.c.bf16 %v955_v51, %v953_v49  ;;  %v1206_v41 = vpack.c.bf16 %v430_v4, %v428_v2  ;;  %v958_v56 = vmul.f32 %v1671_v43, %v658_v5  ;;  %p1412_p11 = por %p1411_p10, %p1410_p9 }
 0x233   :  { %1197 = vmatpush1.bf16.msra.mxu0 %v1196_v14  ;;  %v1264_v13 = vpack.c.bf16 %v950_v42, %v948_v25  ;;  %v423_v14 = vmul.f32 %v1636_v23, %v121_v52  ;;  %v427_v37 = vmul.f32 %v1652_v3, %v125_v11  ;;  %v957_v23 = vmul.f32 %v1666_v34, %v657_v19  ;;  %v136_v42 = vld [vmem:[#allocation2 + $0x238] sm:$0xff]  ;;  %v666_v25 = vld [vmem:[#allocation2 + $0x430] sm:$0xff] }
 0x234   :  { %1199 = vmatprep.subr.bf16.mxu0 %v1198_v6  ;;  %v438_v51 = vmul.f32 %v1654_v26, %v136_v42  ;;  %v965_v26 = vmul.f32 %v1666_v34, %v665_v54  ;;  %v966_v15 = vmul.f32 %v1671_v43, %v666_v25  ;;  %p1413_p12 = pnand %p1412_p11, %p1406_p8 }
 0x235   :  { %1261 = vmatpush1.bf16.msra.mxu1 %v1260_v22  ;;  %v1204_v6 = vpack.c.bf16 %v425_v60, %v423_v14  ;;  %v134_v22 = vld [vmem:[#allocation2 + $0x228] sm:$0xff]  ;;  %v1270_v44 = vpack.c.bf16 %v959_v31, %v957_v23  ;;  %v1208_v46 = vpack.c.bf16 %v429_v40, %v427_v37  ;;  %v664_v60 = vld [vmem:[#allocation2 + $0x420] sm:$0xff] }
 0x236   :  { %1263 = vmatprep.subr.bf16.mxu1 %v1262_v47  ;;  %v956_v47 = vmul.f32 %v1666_v34, %v656_v38  ;;  %v436_v49 = vmul.f32 %v1652_v3, %v134_v22  ;;  %v964_v28 = vmul.f32 %v1666_v34, %v664_v60 }
 0x237   :  { %1201 = vmatpush1.bf16.msra.mxu0 %v1200_v57  ;;  %v967_v57 = vmul.f32 %v1671_v43, %v667_v24 }
 0x238   :  { %1203 = vmatprep.subr.bf16.mxu0 %v1202_v63  ;;  %v1272_v52 = vpack.c.bf16 %v958_v56, %v956_v47  ;;  %v1214_v3 = vpack.c.bf16 %v438_v51, %v436_v49  ;;  %v1280_v58 = vpack.c.bf16 %v966_v15, %v964_v28 }
 0x239   :  { %1265 = vmatpush1.bf16.msra.mxu1 %v1264_v13 }
 0x23a   :  { %1267 = vmatprep.subr.bf16.mxu1 %v1266_v45 }
 0x23b   :  { %1205 = vmatpush1.bf16.msra.mxu0 %v1204_v6 }
 0x23c   :  { %1207 = vmatprep.subr.bf16.mxu0 %v1206_v41 }
 0x23d   :  { %1269 = vmatpush1.bf16.msra.mxu1 %v1268_v55 }
 0x23e   :  { %1271 = vmatprep.subr.bf16.mxu1 %v1270_v44 }
 0x23f   :  { %1209 = vmatpush1.bf16.msra.mxu0 %v1208_v46 }
 0x240   :  { %1211 = vmatprep.subr.bf16.mxu0 %v1210_v32  ;;  %v1278_v32 = vpack.c.bf16 %v967_v57, %v965_v26 }
 0x241   :  { %1273 = vmatpush1.bf16.msra.mxu1 %v1272_v52 }
 0x242   :  { %1275 = vmatprep.subr.bf16.mxu1 %v1274_v39  ;;  %508 = vmatmul.mubr.f32.vlgmr.msra.gmra.mrb[0].mxu0 %v60_v53  ;;  %v673_v39 = vld [vmem:[#allocation2 + $0x468] sm:$0xff] }
 0x243   :  { %1213 = vmatpush1.bf16.msra.mxu0 %v1212_v8  ;;  %578 = vmatprep.mubr.f32.mxu0 %v1436_v20  ;;  %v975_v8 = vmul.f32 %v1671_v43, %v675_v29  ;;  %v973_v33 = vmul.f32 %v1666_v34, %v673_v39  ;;  %v588_v43 = vpop.permute.xlu1 %587 }
 0x244   :  { %1215 = vmatprep.subr.bf16.mxu0 %v1214_v3 }
 0x245   :  { %1277 = vmatpush1.bf16.msra.mxu1 %v1276_v48  ;;  %v1286_v35 = vpack.c.bf16 %v975_v8, %v973_v33 }
 0x246   :  { %1279 = vmatprep.subr.bf16.mxu1 %v1278_v32 }
 0x247   :  { %1217 = vmatpush1.bf16.msra.mxu0 %v1216_v62 }
 0x249   :  { %1281 = vmatpush1.bf16.msra.mxu1 %v1280_v58 }
 0x24a   :  { %1283 = vmatprep.subr.bf16.mxu1 %v1282_v16  ;;  %1144 = vmatmul.mubr.msk.f32.vlgmr.msra.gmra.mrb[0].mxu0 %vm439_vm2, %v62_v30 }
 0x24c   :  { %1041 = vmatmul.mubr.f32.vlgmr.msra.gmra.mrb[0].mxu1 %v60_v53 }
 0x24d   :  { %1285 = vmatpush1.bf16.msra.mxu1 %v1284_v36  ;;  %1111 = vmatprep.mubr.f32.mxu1 %v1436_v20 }
 0x24e   :  { %1287 = vmatprep.subr.bf16.mxu1 %v1286_v35 }
 0x251   :  { %1289 = vmatpush1.bf16.msra.mxu1 %v1288_v27 }
 0x254   :  { %1145 = vmatmul.mubr.msk.f32.vlgmr.msra.gmra.mrb[0].mxu1 %vm439_vm2, %v62_v30 }
 0x31d   :  { %v580_v48 = vpop.f32.mrb[0].mxu0 }
 0x31e   :  { %v590_v7 = vmul.f32 %v588_v43, %v580_v48  ;;  %v582_v59 = vpop.f32.mrb[1].mxu0 }
 0x31f   :  { %v591_v10 = vmul.f32 %v588_v43, %v582_v59 }
 0x320   :  { %v597_v34 = vadd.f32 %v595_v0, %v590_v7 }
 0x321   :  { %v598_v62 = vadd.f32 %v595_v0, %v591_v10 }
 0x322   :  { %v599_v16 = vmax.f32 %v597_v34, 0.0 }
 0x323   :  { %v600_v61 = vmax.f32 %v598_v62, 0.0 }
 0x324   :  { %601 = vst [vmem:[#allocation5] sm:$0xff] %v599_v16 }
 0x325   :  { %602 = vst [vmem:[#allocation5 + $0x8] sm:$0xff] %v600_v61 }
 0x327   :  { %v1113_v1 = vpop.f32.mrb[0].mxu1 }
 0x328   :  { %v1118_v50 = vmul.f32 %v1113_v1, %v588_v43  ;;  %v1115_v36 = vpop.f32.mrb[1].mxu1 }
 0x329   :  { %v1119_v63 = vmul.f32 %v1115_v36, %v588_v43 }
 0x32a   :  { %v1120_v2 = vadd.f32 %v1118_v50, %v595_v0 }
 0x32b   :  { %v1121_v17 = vadd.f32 %v1119_v63, %v595_v0 }
 0x32c   :  { %v1122_v18 = vmax.f32 %v1120_v2, 0.0 }
 0x32d   :  { %v1123_v27 = vmax.f32 %v1121_v17, 0.0 }
 0x32e   :  { %1125 = vst [vmem:[#allocation5 + $0x10] sm:$0xff] %v1122_v18 }
 0x32f   :  { %1126 = vst [vmem:[#allocation5 + $0x18] sm:$0xff] %v1123_v27 }
 0x330   :  { %1416 = shalt.err (!%p1413_p12)
}
 0x331   :  { %s1417_s14 = scalar_lea.hbm %s1939_s8, 512 }
 0x332   :  { %p1418_p13 = scmp.ne.s32.totalorder %s1939_s8, %s1417_s14  ;;  %p1421_p0 = scmp.lt.u32.totalorder %s1417_s14, %s1939_s8 }
 0x334   :  { %p1423_p1 = pnand %p1421_p0, %p1418_p13 }
 0x336   :  { %1426 = shalt.err (!%p1423_p1)
}
 0x337   :  { %1138 = dma.vmem_to_hbm [thread:$0]  %s1133_s3, 512, %s1939_s8, [#allocation4], %s1432_s15, %s1432_s15, %s1433_s16  }
 0x338   :  { %1429 = dma.done.wait [#allocation4], 512  }
 0x339   :  { %1430 = vsyncadd [#allocation4], 4294966784 }
 0x33a   :  { %1142 = vsyncpa [#allocation3], 1 }
 0x33b   :  { %1143 = vsyncpa [#allocation4], 1 }

</bundles_post_ra>
